<compile_context>
chip_gen: v7x
topology: tpu7x:2x2x1
jax: 0.10.0
libtpu: 0.0.40
codegen_flags: <defaults>
</compile_context>

<pallas_src>
import math
import numpy as np

import jax
import jax.numpy as jnp
from jax import lax
from jax.experimental import pallas as pl
from jax.experimental.pallas import tpu as pltpu

# ---------------- static configuration ----------------
B, S, H = 2, 8, 32          # batch, seq_len, hidden_size
BF = 3                      # branching_factor
R = B * S                   # flattened token rows (16)
HB = H * BF                 # fused branch lane width (96)
LANES = 128
SUBL_W = 16                 # bf16 sublane-group alignment for packed blocks
LN_EPS = 1e-5
F32 = jnp.float32
BF16 = jnp.bfloat16

# ---------------- packed-parameter layouts (static) ----------------
# bf16 weight/constant pack: (name, rows, cols); each block padded to 16 rows.
W_LAYOUT = [
    ("win", H, H), ("wtp", H, H), ("w1f", H, HB),
    ("ln96", HB, HB), ("w2bd", HB, HB), ("wpairs", HB, HB), ("wc2seg", HB, BF),
    ("pool", B, R), ("e3", BF, HB), ("sum3", HB, H), ("exp", R, B),
    ("pairmap", BF, BF), ("wdiv", H, BF), ("woi", H, H), ("wout", H, H),
]
# f32 vector pack: one row per vector, payload in lanes [0:width].
V_LAYOUT = [
    ("bin", H), ("btp", H), ("b1f", HB), ("g1f", HB), ("e1f", HB), ("b2f", HB),
    ("bc1t", HB), ("gct", HB), ("ect", HB),
    ("boi", H), ("goi", H), ("eoi", H), ("bout", H), ("gf", H), ("ef", H),
    ("bdiv", BF), ("bc2t", BF), ("iota3", BF),
]


def _build_w_offsets():
    offs, off = {}, 0
    for name, r, c in W_LAYOUT:
        offs[name] = (off, r, c)
        off += -(-r // SUBL_W) * SUBL_W
    return offs, off


W_OFFSETS, W_ROWS = _build_w_offsets()
V_ROWS = -(-len(V_LAYOUT) // 8) * 8


# ---------------- shared math (kernel body AND plain-JAX reference) ----------------
def _bdot(a, b):
    """Single-pass bf16 MXU matmul with f32 accumulation."""
    return jnp.dot(a.astype(BF16), b.astype(BF16), preferred_element_type=F32)


def _gelu(v):
    # exact (erf) GELU, matching torch.nn.GELU() default
    return 0.5 * v * (1.0 + lax.erf(v * 0.7071067811865476))


def _ln32(v, g, b):
    """One-pass LayerNorm over the (single) 32-lane hidden dim."""
    mu = jnp.mean(v, axis=-1, keepdims=True)
    ex2 = jnp.mean(v * v, axis=-1, keepdims=True)
    var = jnp.maximum(ex2 - mu * mu, 0.0)
    return (v - mu) * lax.rsqrt(var + LN_EPS) * g + b


def _ln_seg(v, m96, g, b):
    """Per-32-lane-segment LayerNorm on a (rows, 96) activation.

    Segment mean and E[x^2] are computed with one block-diagonal averaging
    matmul each (already broadcast across the segment lanes), keeping the
    reductions on the idle MXU slot instead of serial XLU lane reductions.
    """
    mu = _bdot(v, m96)
    ex2 = _bdot(v * v, m96)
    var = jnp.maximum(ex2 - mu * mu, 0.0)
    return (v - mu) * lax.rsqrt(var + LN_EPS) * g + b


def _unpack(w_ref, v_ref):
    """Static-sliced views of the packed weight / vector refs (or arrays)."""
    d = {}
    for name, (off, r, c) in W_OFFSETS.items():
        d[name] = w_ref[off:off + r, 0:c]
    for i, (name, width) in enumerate(V_LAYOUT):
        d[name] = v_ref[i:i + 1, 0:width]
    return d


def _forward2d(x2d, d):
    """Full TreeReasoningModule forward on (B*S, H) input. Shared by kernel & reference."""
    # --- TreeReasoningModule.input_projection ---
    xp = _bdot(x2d, d["win"]) + d["bin"]                         # (R, H)

    # --- ThoughtGenerator (max_tree_depth=1 -> single expansion), 3 branches fused ---
    proj = _bdot(xp, d["wtp"]) + d["btp"]                        # (R, H)
    h1 = _bdot(proj, d["w1f"]) + d["b1f"]                        # (R, 3H)  layer 1, all branches
    a1 = _gelu(_ln_seg(h1, d["ln96"], d["g1f"], d["e1f"]))
    t_all = _bdot(a1, d["w2bd"]) + d["b2f"]                      # (R, 3H)  raw thoughts (lane segments)

    # diversity weights = softmax(diversity_head(mean_seq(projected_input)))
    # TODO(synk): diversity_loss (normalize+bmm) in the torch code is dead code
    # (never used for the output), so it is not computed here.
    pooled_in = _bdot(d["pool"], xp)                             # (B, H)   MXU seq pooling
    logits = _bdot(pooled_in, d["wdiv"]) + d["bdiv"]             # (B, BF)
    logits = logits - jnp.max(logits, axis=1, keepdims=True)
    e_l = jnp.exp(logits)
    dw = e_l / jnp.sum(e_l, axis=1, keepdims=True)               # (B, BF) softmax

    # --- ConsistencyChecker over the BF diversity-weighted leaf thoughts ---
    pool_t = _bdot(d["pool"], t_all)                             # (B, 3H)  pooled raw thoughts
    pw = pool_t * _bdot(dw, d["e3"])                             # (B, 3H)  diversity-weighted pooled
    feats = _bdot(pw, d["wpairs"]) + d["bc1t"]                   # (B, 3H)  pair features (0,1)(0,2)(1,2)
    feats = _gelu(_ln_seg(feats, d["ln96"], d["gct"], d["ect"]))
    scores = jax.nn.sigmoid(_bdot(feats, d["wc2seg"]) + d["bc2t"])   # (B, BF) = [s01, s02, s12]
    avg = (1.0 + _bdot(scores, d["pairmap"])) * (1.0 / BF)       # (B, BF) avg consistency (diag=1)

    # per-batch first-argmax (matches torch.argmax tie-break) -> one-hot select
    # TODO(synk): bf16 matmul scores can flip the argmax vs f32 torch for
    # near-tied leaves; numerics otherwise match to bf16 precision.
    mx = jnp.max(avg, axis=1, keepdims=True)
    iota = d["iota3"]                                             # (1, BF) = [0, 1, 2]
    best = jnp.min(jnp.where(avg >= mx, iota, float(BF)), axis=1, keepdims=True)
    onehot = (iota == best).astype(F32)                           # (B, BF)
    wsel = onehot * dw                                            # selected thought carries dw (once)

    # select best (diversity-weighted) thought per batch element
    wrow96 = _bdot(_bdot(d["exp"], wsel), d["e3"])                # (R, 3H)
    selected = _bdot(t_all * wrow96, d["sum3"])                   # (R, H)

    # --- TreeOfThoughtReasoner.output_integration (Linear + LN; dropout=eval identity) ---
    oi = _ln32(_bdot(selected, d["woi"]) + d["boi"], d["goi"], d["eoi"])

    # --- TreeReasoningModule.output_projection + residual LayerNorm ---
    op = _bdot(oi, d["wout"]) + d["bout"]
    return _ln32(op + x2d, d["gf"], d["ef"])                      # (R, H)


# ---------------- host-side parameter packing ----------------
def pack_weights(p):
    """Pack all matmul weights + structural constants into one (W_ROWS, 128) bf16 array."""
    a = lambda x: np.asarray(x, np.float32)
    mats = {}
    mats["win"], mats["wtp"] = a(p["win"]), a(p["wtp"])
    mats["wdiv"], mats["woi"], mats["wout"] = a(p["wdiv"]), a(p["woi"]), a(p["wout"])

    # fused branch layer 1 and block-diagonal branch layer 2
    mats["w1f"] = np.concatenate([a(p[f"w1_{i}"]) for i in range(BF)], axis=1)
    w2bd = np.zeros((HB, HB), np.float32)
    for i in range(BF):
        w2bd[i * H:(i + 1) * H, i * H:(i + 1) * H] = a(p[f"w2_{i}"])
    mats["w2bd"] = w2bd

    # block-diagonal per-segment averaging matrix (for segment LN stats)
    ln96 = np.zeros((HB, HB), np.float32)
    for i in range(BF):
        ln96[i * H:(i + 1) * H, i * H:(i + 1) * H] = 1.0 / H
    mats["ln96"] = ln96

    # consistency checker: one fused weight for the 3 pairs, and the score head
    wc1a, wc1b = a(p["wc1a"]), a(p["wc1b"])
    pairs = [(0, 1), (0, 2), (1, 2)]
    wpairs = np.zeros((HB, HB), np.float32)
    wc2seg = np.zeros((HB, BF), np.float32)
    for pidx, (i, j) in enumerate(pairs):
        wpairs[i * H:(i + 1) * H, pidx * H:(pidx + 1) * H] += wc1a
        wpairs[j * H:(j + 1) * H, pidx * H:(pidx + 1) * H] += wc1b
        wc2seg[pidx * H:(pidx + 1) * H, pidx:pidx + 1] = a(p["wc2"])
    mats["wpairs"], mats["wc2seg"] = wpairs, wc2seg

    # structural constants
    pool = np.zeros((B, R), np.float32)
    expb = np.zeros((R, B), np.float32)
    for b in range(B):
        pool[b, b * S:(b + 1) * S] = 1.0 / S
        expb[b * S:(b + 1) * S, b] = 1.0
    e3 = np.zeros((BF, HB), np.float32)
    for i in range(BF):
        e3[i, i * H:(i + 1) * H] = 1.0
    mats["pool"], mats["exp"], mats["e3"] = pool, expb, e3
    mats["sum3"] = np.concatenate([np.eye(H, dtype=np.float32)] * BF, axis=0)
    mats["pairmap"] = np.array([[1, 1, 0], [1, 0, 1], [0, 1, 1]], np.float32)

    packed = np.zeros((W_ROWS, LANES), np.float32)
    for name, (off, r, c) in W_OFFSETS.items():
        m = mats[name]
        assert m.shape == (r, c), (name, m.shape, (r, c))
        packed[off:off + r, 0:c] = m
    return jnp.asarray(packed, BF16)


def pack_vectors(p):
    """Pack biases / LN affines / tiny constants into one (V_ROWS, 128) f32 array."""
    a = lambda x: np.asarray(x, np.float32).reshape(-1)
    vecs = {
        "bin": a(p["bin"]), "btp": a(p["btp"]),
        "b1f": np.concatenate([a(p[f"b1_{i}"]) for i in range(BF)]),
        "g1f": np.concatenate([a(p[f"g1_{i}"]) for i in range(BF)]),
        "e1f": np.concatenate([a(p[f"e1_{i}"]) for i in range(BF)]),
        "b2f": np.concatenate([a(p[f"b2_{i}"]) for i in range(BF)]),
        "bc1t": np.tile(a(p["bc1"]), BF),
        "gct": np.tile(a(p["gc"]), BF),
        "ect": np.tile(a(p["ec"]), BF),
        "boi": a(p["boi"]), "goi": a(p["goi"]), "eoi": a(p["eoi"]),
        "bout": a(p["bout"]), "gf": a(p["gf"]), "ef": a(p["ef"]),
        "bdiv": a(p["bdiv"]),
        "bc2t": np.tile(a(p["bc2"]), BF),
        "iota3": np.arange(BF, dtype=np.float32),
    }
    packed = np.zeros((V_ROWS, LANES), np.float32)
    for i, (name, width) in enumerate(V_LAYOUT):
        v = vecs[name]
        assert v.shape[0] == width, (name, v.shape, width)
        packed[i, 0:width] = v
    return jnp.asarray(packed, F32)


# ---------------- the Pallas kernel ----------------
def tree_reasoning_kernel(x_ref, w_ref, v_ref, out_ref):
    d = _unpack(w_ref, v_ref)
    out_ref[...] = _forward2d(x_ref[...], d)        # plain (R, H) store


@jax.jit
def tree_reasoning_forward(x, wpack, vpack):
    x2d = x.reshape(R, H)                            # free wrapper-side reshape
    out2d = pl.pallas_call(
        tree_reasoning_kernel,
        out_shape=jax.ShapeDtypeStruct((R, H), F32),
        in_specs=[pl.BlockSpec(memory_space=pltpu.MemorySpace.VMEM)] * 3,
        out_specs=pl.BlockSpec(memory_space=pltpu.MemorySpace.VMEM),
    )(x2d, wpack, vpack)
    return out2d.reshape(B, S, H)


def build_reasoning_trace():
    # Tree structure is static here (root + BF leaves); built host-side.
    # TODO(synk): node values are None because use_value_function=False.
    children = [{"id": i + 1, "depth": 1, "value": None, "uncertainty": None,
                 "children": []} for i in range(BF)]
    tree = ({"id": 0, "depth": 0, "value": None, "uncertainty": None,
             "children": children}, BF + 1)
    return {"num_nodes_explored": 1 + BF,
            "max_depth": 1,
            "final_values": [0.0] * BF,
            "tree_structure": tree}


# ---------------- deterministic parameter init ----------------
def make_params(key):
    keys = iter(jax.random.split(key, 64))

    def lin(fan_in, fan_out):
        w = jax.random.normal(next(keys), (fan_in, fan_out), F32) / math.sqrt(fan_in)
        b = 0.01 * jax.random.normal(next(keys), (1, fan_out), F32)
        return w, b

    def ln():
        g = 1.0 + 0.1 * jax.random.normal(next(keys), (1, H), F32)
        e = 0.01 * jax.random.normal(next(keys), (1, H), F32)
        return g, e

    p = {}
    p["win"], p["bin"] = lin(H, H)
    p["wtp"], p["btp"] = lin(H, H)
    for i in range(BF):
        p[f"w1_{i}"], p[f"b1_{i}"] = lin(H, H)
        p[f"g1_{i}"], p[f"e1_{i}"] = ln()
        p[f"w2_{i}"], p[f"b2_{i}"] = lin(H, H)
    p["wdiv"], p["bdiv"] = lin(H, BF)
    wc1, p["bc1"] = lin(2 * H, H)
    p["wc1a"], p["wc1b"] = wc1[:H, :], wc1[H:, :]              # split of the (2H, H) weight
    p["gc"], p["ec"] = ln()
    p["wc2"], p["bc2"] = lin(H, 1)
    p["woi"], p["boi"] = lin(H, H)
    p["goi"], p["eoi"] = ln()
    p["wout"], p["bout"] = lin(H, H)
    p["gf"], p["ef"] = ln()
    return p


if __name__ == "__main__":
    key = jax.random.PRNGKey(0)
    kx, kp = jax.random.split(key)
    x = jax.random.normal(kx, (B, S, H), F32)
    params = make_params(kp)
    wpack = pack_weights(params)
    vpack = pack_vectors(params)

    out = jax.block_until_ready(tree_reasoning_forward(x, wpack, vpack))
    trace = build_reasoning_trace()

    # sanity check: identical math traced as plain JAX (same packed bf16 weights).
    ref = _forward2d(x.reshape(R, H), _unpack(wpack, vpack)).reshape(B, S, H)
    err = float(jnp.max(jnp.abs(out - ref)))
    if not np.isfinite(err) or err > 5e-2:
        raise AssertionError(f"Pallas output mismatch vs JAX reference, max |diff| = {err}")

    print("KERNEL_OK")
</pallas_src>

<mosaic_0001>
module attributes {stable_mosaic.version = 11 : i64} {
  func.func @tree_reasoning_kernel(%arg0: memref<16x32xf32, #tpu.memory_space<vmem>>, %arg1: memref<736x128xbf16, #tpu.memory_space<vmem>>, %arg2: memref<24x128xf32, #tpu.memory_space<vmem>>, %arg3: memref<16x32xf32, #tpu.memory_space<vmem>>) attributes {dimension_semantics = [], scalar_prefetch = 0 : i64, scratch_operands = 0 : i64, tpu.core_type = #tpu.core_type<tc>} {
    %c0 = arith.constant 0 : index
    %c0_0 = arith.constant 0 : index
    %0 = vector.load %arg1[%c0, %c0_0] : memref<736x128xbf16, #tpu.memory_space<vmem>>, vector<32x32xbf16>
    %c32 = arith.constant 32 : index
    %c0_1 = arith.constant 0 : index
    %1 = vector.load %arg1[%c32, %c0_1] : memref<736x128xbf16, #tpu.memory_space<vmem>>, vector<32x32xbf16>
    %c64 = arith.constant 64 : index
    %c0_2 = arith.constant 0 : index
    %2 = vector.load %arg1[%c64, %c0_2] : memref<736x128xbf16, #tpu.memory_space<vmem>>, vector<32x96xbf16>
    %c96 = arith.constant 96 : index
    %c0_3 = arith.constant 0 : index
    %3 = vector.load %arg1[%c96, %c0_3] : memref<736x128xbf16, #tpu.memory_space<vmem>>, vector<96x96xbf16>
    %c192 = arith.constant 192 : index
    %c0_4 = arith.constant 0 : index
    %4 = vector.load %arg1[%c192, %c0_4] : memref<736x128xbf16, #tpu.memory_space<vmem>>, vector<96x96xbf16>
    %c288 = arith.constant 288 : index
    %c0_5 = arith.constant 0 : index
    %5 = vector.load %arg1[%c288, %c0_5] : memref<736x128xbf16, #tpu.memory_space<vmem>>, vector<96x96xbf16>
    %c384 = arith.constant 384 : index
    %c0_6 = arith.constant 0 : index
    %6 = vector.load %arg1[%c384, %c0_6] : memref<736x128xbf16, #tpu.memory_space<vmem>>, vector<96x3xbf16>
    %c480 = arith.constant 480 : index
    %c0_7 = arith.constant 0 : index
    %7 = vector.load %arg1[%c480, %c0_7] : memref<736x128xbf16, #tpu.memory_space<vmem>>, vector<2x16xbf16>
    %c496 = arith.constant 496 : index
    %c0_8 = arith.constant 0 : index
    %8 = vector.load %arg1[%c496, %c0_8] : memref<736x128xbf16, #tpu.memory_space<vmem>>, vector<3x96xbf16>
    %c512 = arith.constant 512 : index
    %c0_9 = arith.constant 0 : index
    %9 = vector.load %arg1[%c512, %c0_9] : memref<736x128xbf16, #tpu.memory_space<vmem>>, vector<96x32xbf16>
    %c608 = arith.constant 608 : index
    %c0_10 = arith.constant 0 : index
    %10 = vector.load %arg1[%c608, %c0_10] : memref<736x128xbf16, #tpu.memory_space<vmem>>, vector<16x2xbf16>
    %c624 = arith.constant 624 : index
    %c0_11 = arith.constant 0 : index
    %11 = vector.load %arg1[%c624, %c0_11] : memref<736x128xbf16, #tpu.memory_space<vmem>>, vector<3x3xbf16>
    %c640 = arith.constant 640 : index
    %c0_12 = arith.constant 0 : index
    %12 = vector.load %arg1[%c640, %c0_12] : memref<736x128xbf16, #tpu.memory_space<vmem>>, vector<32x3xbf16>
    %c672 = arith.constant 672 : index
    %c0_13 = arith.constant 0 : index
    %13 = vector.load %arg1[%c672, %c0_13] : memref<736x128xbf16, #tpu.memory_space<vmem>>, vector<32x32xbf16>
    %c704 = arith.constant 704 : index
    %c0_14 = arith.constant 0 : index
    %14 = vector.load %arg1[%c704, %c0_14] : memref<736x128xbf16, #tpu.memory_space<vmem>>, vector<32x32xbf16>
    %c0_15 = arith.constant 0 : index
    %c0_16 = arith.constant 0 : index
    %15 = vector.load %arg2[%c0_15, %c0_16] : memref<24x128xf32, #tpu.memory_space<vmem>>, vector<1x32xf32>
    %c1 = arith.constant 1 : index
    %c0_17 = arith.constant 0 : index
    %16 = vector.load %arg2[%c1, %c0_17] : memref<24x128xf32, #tpu.memory_space<vmem>>, vector<1x32xf32>
    %c2 = arith.constant 2 : index
    %c0_18 = arith.constant 0 : index
    %17 = vector.load %arg2[%c2, %c0_18] : memref<24x128xf32, #tpu.memory_space<vmem>>, vector<1x96xf32>
    %c3 = arith.constant 3 : index
    %c0_19 = arith.constant 0 : index
    %18 = vector.load %arg2[%c3, %c0_19] : memref<24x128xf32, #tpu.memory_space<vmem>>, vector<1x96xf32>
    %c4 = arith.constant 4 : index
    %c0_20 = arith.constant 0 : index
    %19 = vector.load %arg2[%c4, %c0_20] : memref<24x128xf32, #tpu.memory_space<vmem>>, vector<1x96xf32>
    %c5 = arith.constant 5 : index
    %c0_21 = arith.constant 0 : index
    %20 = vector.load %arg2[%c5, %c0_21] : memref<24x128xf32, #tpu.memory_space<vmem>>, vector<1x96xf32>
    %c6 = arith.constant 6 : index
    %c0_22 = arith.constant 0 : index
    %21 = vector.load %arg2[%c6, %c0_22] : memref<24x128xf32, #tpu.memory_space<vmem>>, vector<1x96xf32>
    %c7 = arith.constant 7 : index
    %c0_23 = arith.constant 0 : index
    %22 = vector.load %arg2[%c7, %c0_23] : memref<24x128xf32, #tpu.memory_space<vmem>>, vector<1x96xf32>
    %c8 = arith.constant 8 : index
    %c0_24 = arith.constant 0 : index
    %23 = vector.load %arg2[%c8, %c0_24] : memref<24x128xf32, #tpu.memory_space<vmem>>, vector<1x96xf32>
    %c9 = arith.constant 9 : index
    %c0_25 = arith.constant 0 : index
    %24 = vector.load %arg2[%c9, %c0_25] : memref<24x128xf32, #tpu.memory_space<vmem>>, vector<1x32xf32>
    %c10 = arith.constant 10 : index
    %c0_26 = arith.constant 0 : index
    %25 = vector.load %arg2[%c10, %c0_26] : memref<24x128xf32, #tpu.memory_space<vmem>>, vector<1x32xf32>
    %c11 = arith.constant 11 : index
    %c0_27 = arith.constant 0 : index
    %26 = vector.load %arg2[%c11, %c0_27] : memref<24x128xf32, #tpu.memory_space<vmem>>, vector<1x32xf32>
    %c12 = arith.constant 12 : index
    %c0_28 = arith.constant 0 : index
    %27 = vector.load %arg2[%c12, %c0_28] : memref<24x128xf32, #tpu.memory_space<vmem>>, vector<1x32xf32>
    %c13 = arith.constant 13 : index
    %c0_29 = arith.constant 0 : index
    %28 = vector.load %arg2[%c13, %c0_29] : memref<24x128xf32, #tpu.memory_space<vmem>>, vector<1x32xf32>
    %c14 = arith.constant 14 : index
    %c0_30 = arith.constant 0 : index
    %29 = vector.load %arg2[%c14, %c0_30] : memref<24x128xf32, #tpu.memory_space<vmem>>, vector<1x32xf32>
    %c15 = arith.constant 15 : index
    %c0_31 = arith.constant 0 : index
    %30 = vector.load %arg2[%c15, %c0_31] : memref<24x128xf32, #tpu.memory_space<vmem>>, vector<1x3xf32>
    %c16 = arith.constant 16 : index
    %c0_32 = arith.constant 0 : index
    %31 = vector.load %arg2[%c16, %c0_32] : memref<24x128xf32, #tpu.memory_space<vmem>>, vector<1x3xf32>
    %c17 = arith.constant 17 : index
    %c0_33 = arith.constant 0 : index
    %32 = vector.load %arg2[%c17, %c0_33] : memref<24x128xf32, #tpu.memory_space<vmem>>, vector<1x3xf32>
    %c0_34 = arith.constant 0 : index
    %c0_35 = arith.constant 0 : index
    %33 = vector.load %arg0[%c0_34, %c0_35] : memref<16x32xf32, #tpu.memory_space<vmem>>, vector<16x32xf32>
    %34 = arith.truncf %33 : vector<16x32xf32> to vector<16x32xbf16>
    %cst = arith.constant dense<0.000000e+00> : vector<16x32xf32>
    %35 = tpu.matmul %34, %0, %cst {dimension_numbers = #tpu.dot_dimension_numbers<[1], [0], [0], [1], [0, 0, 1, 1], [], []>} : vector<16x32xbf16>, vector<32x32xbf16>, vector<16x32xf32> -> vector<16x32xf32>
    %36 = vector.broadcast %15 : vector<1x32xf32> to vector<16x32xf32>
    %37 = arith.addf %35, %36 : vector<16x32xf32>
    %38 = arith.truncf %37 : vector<16x32xf32> to vector<16x32xbf16>
    %cst_36 = arith.constant dense<0.000000e+00> : vector<16x32xf32>
    %39 = tpu.matmul %38, %1, %cst_36 {dimension_numbers = #tpu.dot_dimension_numbers<[1], [0], [0], [1], [0, 0, 1, 1], [], []>} : vector<16x32xbf16>, vector<32x32xbf16>, vector<16x32xf32> -> vector<16x32xf32>
    %40 = vector.broadcast %16 : vector<1x32xf32> to vector<16x32xf32>
    %41 = arith.addf %39, %40 : vector<16x32xf32>
    %42 = arith.truncf %41 : vector<16x32xf32> to vector<16x32xbf16>
    %cst_37 = arith.constant dense<0.000000e+00> : vector<16x96xf32>
    %43 = tpu.matmul %42, %2, %cst_37 {dimension_numbers = #tpu.dot_dimension_numbers<[1], [0], [0], [1], [0, 0, 1, 1], [], []>} : vector<16x32xbf16>, vector<32x96xbf16>, vector<16x96xf32> -> vector<16x96xf32>
    %44 = vector.broadcast %17 : vector<1x96xf32> to vector<16x96xf32>
    %45 = arith.addf %43, %44 : vector<16x96xf32>
    %46 = arith.truncf %45 : vector<16x96xf32> to vector<16x96xbf16>
    %cst_38 = arith.constant dense<0.000000e+00> : vector<16x96xf32>
    %47 = tpu.matmul %46, %3, %cst_38 {dimension_numbers = #tpu.dot_dimension_numbers<[1], [0], [0], [1], [0, 0, 1, 1], [], []>} : vector<16x96xbf16>, vector<96x96xbf16>, vector<16x96xf32> -> vector<16x96xf32>
    %48 = arith.mulf %45, %45 : vector<16x96xf32>
    %49 = arith.truncf %48 : vector<16x96xf32> to vector<16x96xbf16>
    %cst_39 = arith.constant dense<0.000000e+00> : vector<16x96xf32>
    %50 = tpu.matmul %49, %3, %cst_39 {dimension_numbers = #tpu.dot_dimension_numbers<[1], [0], [0], [1], [0, 0, 1, 1], [], []>} : vector<16x96xbf16>, vector<96x96xbf16>, vector<16x96xf32> -> vector<16x96xf32>
    %51 = arith.mulf %47, %47 : vector<16x96xf32>
    %52 = arith.subf %50, %51 : vector<16x96xf32>
    %cst_40 = arith.constant 0.000000e+00 : f32
    %53 = vector.broadcast %cst_40 : f32 to vector<16x96xf32>
    %54 = arith.maximumf %52, %53 : vector<16x96xf32>
    %55 = arith.subf %45, %47 : vector<16x96xf32>
    %cst_41 = arith.constant 9.99999974E-6 : f32
    %56 = vector.broadcast %cst_41 : f32 to vector<16x96xf32>
    %57 = arith.addf %54, %56 : vector<16x96xf32>
    %58 = math.rsqrt %57 : vector<16x96xf32>
    %59 = arith.mulf %55, %58 : vector<16x96xf32>
    %60 = vector.broadcast %18 : vector<1x96xf32> to vector<16x96xf32>
    %61 = arith.mulf %59, %60 : vector<16x96xf32>
    %62 = vector.broadcast %19 : vector<1x96xf32> to vector<16x96xf32>
    %63 = arith.addf %61, %62 : vector<16x96xf32>
    %cst_42 = arith.constant 5.000000e-01 : f32
    %64 = vector.broadcast %cst_42 : f32 to vector<16x96xf32>
    %65 = arith.mulf %64, %63 : vector<16x96xf32>
    %cst_43 = arith.constant 0.707106769 : f32
    %66 = vector.broadcast %cst_43 : f32 to vector<16x96xf32>
    %67 = arith.mulf %63, %66 : vector<16x96xf32>
    %68 = math.erf %67 : vector<16x96xf32>
    %cst_44 = arith.constant 1.000000e+00 : f32
    %69 = vector.broadcast %cst_44 : f32 to vector<16x96xf32>
    %70 = arith.addf %69, %68 : vector<16x96xf32>
    %71 = arith.mulf %65, %70 : vector<16x96xf32>
    %72 = arith.truncf %71 : vector<16x96xf32> to vector<16x96xbf16>
    %cst_45 = arith.constant dense<0.000000e+00> : vector<16x96xf32>
    %73 = tpu.matmul %72, %4, %cst_45 {dimension_numbers = #tpu.dot_dimension_numbers<[1], [0], [0], [1], [0, 0, 1, 1], [], []>} : vector<16x96xbf16>, vector<96x96xbf16>, vector<16x96xf32> -> vector<16x96xf32>
    %74 = vector.broadcast %20 : vector<1x96xf32> to vector<16x96xf32>
    %75 = arith.addf %73, %74 : vector<16x96xf32>
    %76 = arith.truncf %37 : vector<16x32xf32> to vector<16x32xbf16>
    %cst_46 = arith.constant dense<0.000000e+00> : vector<2x32xf32>
    %77 = tpu.matmul %7, %76, %cst_46 {dimension_numbers = #tpu.dot_dimension_numbers<[1], [0], [0], [1], [0, 0, 1, 1], [], []>} : vector<2x16xbf16>, vector<16x32xbf16>, vector<2x32xf32> -> vector<2x32xf32>
    %78 = arith.truncf %77 : vector<2x32xf32> to vector<2x32xbf16>
    %cst_47 = arith.constant dense<0.000000e+00> : vector<2x3xf32>
    %79 = tpu.matmul %78, %12, %cst_47 {dimension_numbers = #tpu.dot_dimension_numbers<[1], [0], [0], [1], [0, 0, 1, 1], [], []>} : vector<2x32xbf16>, vector<32x3xbf16>, vector<2x3xf32> -> vector<2x3xf32>
    %80 = vector.broadcast %30 : vector<1x3xf32> to vector<2x3xf32>
    %81 = arith.addf %79, %80 : vector<2x3xf32>
    %cst_48 = arith.constant dense<0xFF800000> : vector<2xf32>
    %82 = vector.multi_reduction <maximumf>, %81, %cst_48 [1] : vector<2x3xf32> to vector<2xf32>
    %83 = vector.shape_cast %82 : vector<2xf32> to vector<2x1xf32>
    %84 = vector.broadcast %83 : vector<2x1xf32> to vector<2x3xf32>
    %85 = arith.subf %81, %84 : vector<2x3xf32>
    %86 = math.exp %85 : vector<2x3xf32>
    %cst_49 = arith.constant dense<0.000000e+00> : vector<2xf32>
    %87 = vector.multi_reduction <add>, %86, %cst_49 [1] : vector<2x3xf32> to vector<2xf32>
    %88 = vector.shape_cast %87 : vector<2xf32> to vector<2x1xf32>
    %89 = vector.broadcast %88 : vector<2x1xf32> to vector<2x3xf32>
    %90 = arith.divf %86, %89 : vector<2x3xf32>
    %91 = arith.truncf %75 : vector<16x96xf32> to vector<16x96xbf16>
    %cst_50 = arith.constant dense<0.000000e+00> : vector<2x96xf32>
    %92 = tpu.matmul %7, %91, %cst_50 {dimension_numbers = #tpu.dot_dimension_numbers<[1], [0], [0], [1], [0, 0, 1, 1], [], []>} : vector<2x16xbf16>, vector<16x96xbf16>, vector<2x96xf32> -> vector<2x96xf32>
    %93 = arith.truncf %90 : vector<2x3xf32> to vector<2x3xbf16>
    %cst_51 = arith.constant dense<0.000000e+00> : vector<2x96xf32>
    %94 = tpu.matmul %93, %8, %cst_51 {dimension_numbers = #tpu.dot_dimension_numbers<[1], [0], [0], [1], [0, 0, 1, 1], [], []>} : vector<2x3xbf16>, vector<3x96xbf16>, vector<2x96xf32> -> vector<2x96xf32>
    %95 = arith.mulf %92, %94 : vector<2x96xf32>
    %96 = arith.truncf %95 : vector<2x96xf32> to vector<2x96xbf16>
    %cst_52 = arith.constant dense<0.000000e+00> : vector<2x96xf32>
    %97 = tpu.matmul %96, %5, %cst_52 {dimension_numbers = #tpu.dot_dimension_numbers<[1], [0], [0], [1], [0, 0, 1, 1], [], []>} : vector<2x96xbf16>, vector<96x96xbf16>, vector<2x96xf32> -> vector<2x96xf32>
    %98 = vector.broadcast %21 : vector<1x96xf32> to vector<2x96xf32>
    %99 = arith.addf %97, %98 : vector<2x96xf32>
    %100 = arith.truncf %99 : vector<2x96xf32> to vector<2x96xbf16>
    %cst_53 = arith.constant dense<0.000000e+00> : vector<2x96xf32>
    %101 = tpu.matmul %100, %3, %cst_53 {dimension_numbers = #tpu.dot_dimension_numbers<[1], [0], [0], [1], [0, 0, 1, 1], [], []>} : vector<2x96xbf16>, vector<96x96xbf16>, vector<2x96xf32> -> vector<2x96xf32>
    %102 = arith.mulf %99, %99 : vector<2x96xf32>
    %103 = arith.truncf %102 : vector<2x96xf32> to vector<2x96xbf16>
    %cst_54 = arith.constant dense<0.000000e+00> : vector<2x96xf32>
    %104 = tpu.matmul %103, %3, %cst_54 {dimension_numbers = #tpu.dot_dimension_numbers<[1], [0], [0], [1], [0, 0, 1, 1], [], []>} : vector<2x96xbf16>, vector<96x96xbf16>, vector<2x96xf32> -> vector<2x96xf32>
    %105 = arith.mulf %101, %101 : vector<2x96xf32>
    %106 = arith.subf %104, %105 : vector<2x96xf32>
    %cst_55 = arith.constant 0.000000e+00 : f32
    %107 = vector.broadcast %cst_55 : f32 to vector<2x96xf32>
    %108 = arith.maximumf %106, %107 : vector<2x96xf32>
    %109 = arith.subf %99, %101 : vector<2x96xf32>
    %cst_56 = arith.constant 9.99999974E-6 : f32
    %110 = vector.broadcast %cst_56 : f32 to vector<2x96xf32>
    %111 = arith.addf %108, %110 : vector<2x96xf32>
    %112 = math.rsqrt %111 : vector<2x96xf32>
    %113 = arith.mulf %109, %112 : vector<2x96xf32>
    %114 = vector.broadcast %22 : vector<1x96xf32> to vector<2x96xf32>
    %115 = arith.mulf %113, %114 : vector<2x96xf32>
    %116 = vector.broadcast %23 : vector<1x96xf32> to vector<2x96xf32>
    %117 = arith.addf %115, %116 : vector<2x96xf32>
    %cst_57 = arith.constant 5.000000e-01 : f32
    %118 = vector.broadcast %cst_57 : f32 to vector<2x96xf32>
    %119 = arith.mulf %118, %117 : vector<2x96xf32>
    %cst_58 = arith.constant 0.707106769 : f32
    %120 = vector.broadcast %cst_58 : f32 to vector<2x96xf32>
    %121 = arith.mulf %117, %120 : vector<2x96xf32>
    %122 = math.erf %121 : vector<2x96xf32>
    %cst_59 = arith.constant 1.000000e+00 : f32
    %123 = vector.broadcast %cst_59 : f32 to vector<2x96xf32>
    %124 = arith.addf %123, %122 : vector<2x96xf32>
    %125 = arith.mulf %119, %124 : vector<2x96xf32>
    %126 = arith.truncf %125 : vector<2x96xf32> to vector<2x96xbf16>
    %cst_60 = arith.constant dense<0.000000e+00> : vector<2x3xf32>
    %127 = tpu.matmul %126, %6, %cst_60 {dimension_numbers = #tpu.dot_dimension_numbers<[1], [0], [0], [1], [0, 0, 1, 1], [], []>} : vector<2x96xbf16>, vector<96x3xbf16>, vector<2x3xf32> -> vector<2x3xf32>
    %128 = vector.broadcast %31 : vector<1x3xf32> to vector<2x3xf32>
    %129 = arith.addf %127, %128 : vector<2x3xf32>
    %130 = arith.negf %129 : vector<2x3xf32>
    %131 = math.exp %130 : vector<2x3xf32>
    %cst_61 = arith.constant 1.000000e+00 : f32
    %132 = vector.broadcast %cst_61 : f32 to vector<2x3xf32>
    %133 = arith.addf %132, %131 : vector<2x3xf32>
    %134 = arith.divf %132, %133 : vector<2x3xf32>
    %135 = arith.truncf %134 : vector<2x3xf32> to vector<2x3xbf16>
    %cst_62 = arith.constant dense<0.000000e+00> : vector<2x3xf32>
    %136 = tpu.matmul %135, %11, %cst_62 {dimension_numbers = #tpu.dot_dimension_numbers<[1], [0], [0], [1], [0, 0, 1, 1], [], []>} : vector<2x3xbf16>, vector<3x3xbf16>, vector<2x3xf32> -> vector<2x3xf32>
    %cst_63 = arith.constant 1.000000e+00 : f32
    %137 = vector.broadcast %cst_63 : f32 to vector<2x3xf32>
    %138 = arith.addf %137, %136 : vector<2x3xf32>
    %cst_64 = arith.constant 0.333333343 : f32
    %139 = vector.broadcast %cst_64 : f32 to vector<2x3xf32>
    %140 = arith.mulf %138, %139 : vector<2x3xf32>
    %cst_65 = arith.constant dense<0xFF800000> : vector<2xf32>
    %141 = vector.multi_reduction <maximumf>, %140, %cst_65 [1] : vector<2x3xf32> to vector<2xf32>
    %142 = vector.shape_cast %141 : vector<2xf32> to vector<2x1xf32>
    %143 = vector.broadcast %142 : vector<2x1xf32> to vector<2x3xf32>
    %144 = arith.cmpf oge, %140, %143 : vector<2x3xf32>
    %cst_66 = arith.constant 3.000000e+00 : f32
    %145 = vector.shape_cast %32 : vector<1x3xf32> to vector<1x3xf32>
    %146 = vector.broadcast %145 : vector<1x3xf32> to vector<2x3xf32>
    %147 = vector.broadcast %cst_66 : f32 to vector<2x3xf32>
    %148 = arith.select %144, %146, %147 : vector<2x3xi1>, vector<2x3xf32>
    %cst_67 = arith.constant dense<0x7F800000> : vector<2xf32>
    %149 = vector.multi_reduction <minimumf>, %148, %cst_67 [1] : vector<2x3xf32> to vector<2xf32>
    %150 = vector.shape_cast %149 : vector<2xf32> to vector<2x1xf32>
    %151 = vector.broadcast %32 : vector<1x3xf32> to vector<2x3xf32>
    %152 = vector.broadcast %150 : vector<2x1xf32> to vector<2x3xf32>
    %153 = arith.cmpf oeq, %151, %152 : vector<2x3xf32>
    %154 = arith.extui %153 : vector<2x3xi1> to vector<2x3xi32>
    %155 = arith.sitofp %154 : vector<2x3xi32> to vector<2x3xf32>
    %156 = arith.mulf %155, %90 : vector<2x3xf32>
    %157 = arith.truncf %156 : vector<2x3xf32> to vector<2x3xbf16>
    %cst_68 = arith.constant dense<0.000000e+00> : vector<16x3xf32>
    %158 = tpu.matmul %10, %157, %cst_68 {dimension_numbers = #tpu.dot_dimension_numbers<[1], [0], [0], [1], [0, 0, 1, 1], [], []>} : vector<16x2xbf16>, vector<2x3xbf16>, vector<16x3xf32> -> vector<16x3xf32>
    %159 = arith.truncf %158 : vector<16x3xf32> to vector<16x3xbf16>
    %cst_69 = arith.constant dense<0.000000e+00> : vector<16x96xf32>
    %160 = tpu.matmul %159, %8, %cst_69 {dimension_numbers = #tpu.dot_dimension_numbers<[1], [0], [0], [1], [0, 0, 1, 1], [], []>} : vector<16x3xbf16>, vector<3x96xbf16>, vector<16x96xf32> -> vector<16x96xf32>
    %161 = arith.mulf %75, %160 : vector<16x96xf32>
    %162 = arith.truncf %161 : vector<16x96xf32> to vector<16x96xbf16>
    %cst_70 = arith.constant dense<0.000000e+00> : vector<16x32xf32>
    %163 = tpu.matmul %162, %9, %cst_70 {dimension_numbers = #tpu.dot_dimension_numbers<[1], [0], [0], [1], [0, 0, 1, 1], [], []>} : vector<16x96xbf16>, vector<96x32xbf16>, vector<16x32xf32> -> vector<16x32xf32>
    %164 = arith.truncf %163 : vector<16x32xf32> to vector<16x32xbf16>
    %cst_71 = arith.constant dense<0.000000e+00> : vector<16x32xf32>
    %165 = tpu.matmul %164, %13, %cst_71 {dimension_numbers = #tpu.dot_dimension_numbers<[1], [0], [0], [1], [0, 0, 1, 1], [], []>} : vector<16x32xbf16>, vector<32x32xbf16>, vector<16x32xf32> -> vector<16x32xf32>
    %166 = vector.broadcast %24 : vector<1x32xf32> to vector<16x32xf32>
    %167 = arith.addf %165, %166 : vector<16x32xf32>
    %cst_72 = arith.constant dense<0.000000e+00> : vector<16xf32>
    %168 = vector.multi_reduction <add>, %167, %cst_72 [1] : vector<16x32xf32> to vector<16xf32>
    %169 = vector.shape_cast %168 : vector<16xf32> to vector<16x1xf32>
    %cst_73 = arith.constant 3.200000e+01 : f32
    %170 = vector.broadcast %cst_73 : f32 to vector<16x1xf32>
    %171 = arith.divf %169, %170 : vector<16x1xf32>
    %172 = arith.mulf %167, %167 : vector<16x32xf32>
    %cst_74 = arith.constant dense<0.000000e+00> : vector<16xf32>
    %173 = vector.multi_reduction <add>, %172, %cst_74 [1] : vector<16x32xf32> to vector<16xf32>
    %174 = vector.shape_cast %173 : vector<16xf32> to vector<16x1xf32>
    %cst_75 = arith.constant 3.200000e+01 : f32
    %175 = vector.broadcast %cst_75 : f32 to vector<16x1xf32>
    %176 = arith.divf %174, %175 : vector<16x1xf32>
    %177 = arith.mulf %171, %171 : vector<16x1xf32>
    %178 = arith.subf %176, %177 : vector<16x1xf32>
    %cst_76 = arith.constant 0.000000e+00 : f32
    %179 = vector.broadcast %cst_76 : f32 to vector<16x1xf32>
    %180 = arith.maximumf %178, %179 : vector<16x1xf32>
    %181 = vector.broadcast %171 : vector<16x1xf32> to vector<16x32xf32>
    %182 = arith.subf %167, %181 : vector<16x32xf32>
    %cst_77 = arith.constant 9.99999974E-6 : f32
    %183 = vector.broadcast %cst_77 : f32 to vector<16x1xf32>
    %184 = arith.addf %180, %183 : vector<16x1xf32>
    %185 = math.rsqrt %184 : vector<16x1xf32>
    %186 = vector.broadcast %185 : vector<16x1xf32> to vector<16x32xf32>
    %187 = arith.mulf %182, %186 : vector<16x32xf32>
    %188 = vector.broadcast %25 : vector<1x32xf32> to vector<16x32xf32>
    %189 = arith.mulf %187, %188 : vector<16x32xf32>
    %190 = vector.broadcast %26 : vector<1x32xf32> to vector<16x32xf32>
    %191 = arith.addf %189, %190 : vector<16x32xf32>
    %192 = arith.truncf %191 : vector<16x32xf32> to vector<16x32xbf16>
    %cst_78 = arith.constant dense<0.000000e+00> : vector<16x32xf32>
    %193 = tpu.matmul %192, %14, %cst_78 {dimension_numbers = #tpu.dot_dimension_numbers<[1], [0], [0], [1], [0, 0, 1, 1], [], []>} : vector<16x32xbf16>, vector<32x32xbf16>, vector<16x32xf32> -> vector<16x32xf32>
    %194 = vector.broadcast %27 : vector<1x32xf32> to vector<16x32xf32>
    %195 = arith.addf %193, %194 : vector<16x32xf32>
    %196 = arith.addf %195, %33 : vector<16x32xf32>
    %cst_79 = arith.constant dense<0.000000e+00> : vector<16xf32>
    %197 = vector.multi_reduction <add>, %196, %cst_79 [1] : vector<16x32xf32> to vector<16xf32>
    %198 = vector.shape_cast %197 : vector<16xf32> to vector<16x1xf32>
    %cst_80 = arith.constant 3.200000e+01 : f32
    %199 = vector.broadcast %cst_80 : f32 to vector<16x1xf32>
    %200 = arith.divf %198, %199 : vector<16x1xf32>
    %201 = arith.mulf %196, %196 : vector<16x32xf32>
    %cst_81 = arith.constant dense<0.000000e+00> : vector<16xf32>
    %202 = vector.multi_reduction <add>, %201, %cst_81 [1] : vector<16x32xf32> to vector<16xf32>
    %203 = vector.shape_cast %202 : vector<16xf32> to vector<16x1xf32>
    %cst_82 = arith.constant 3.200000e+01 : f32
    %204 = vector.broadcast %cst_82 : f32 to vector<16x1xf32>
    %205 = arith.divf %203, %204 : vector<16x1xf32>
    %206 = arith.mulf %200, %200 : vector<16x1xf32>
    %207 = arith.subf %205, %206 : vector<16x1xf32>
    %cst_83 = arith.constant 0.000000e+00 : f32
    %208 = vector.broadcast %cst_83 : f32 to vector<16x1xf32>
    %209 = arith.maximumf %207, %208 : vector<16x1xf32>
    %210 = vector.broadcast %200 : vector<16x1xf32> to vector<16x32xf32>
    %211 = arith.subf %196, %210 : vector<16x32xf32>
    %cst_84 = arith.constant 9.99999974E-6 : f32
    %212 = vector.broadcast %cst_84 : f32 to vector<16x1xf32>
    %213 = arith.addf %209, %212 : vector<16x1xf32>
    %214 = math.rsqrt %213 : vector<16x1xf32>
    %215 = vector.broadcast %214 : vector<16x1xf32> to vector<16x32xf32>
    %216 = arith.mulf %211, %215 : vector<16x32xf32>
    %217 = vector.broadcast %28 : vector<1x32xf32> to vector<16x32xf32>
    %218 = arith.mulf %216, %217 : vector<16x32xf32>
    %219 = vector.broadcast %29 : vector<1x32xf32> to vector<16x32xf32>
    %220 = arith.addf %218, %219 : vector<16x32xf32>
    %c0_85 = arith.constant 0 : index
    %c0_86 = arith.constant 0 : index
    %221 = vector.load %arg3[%c0_85, %c0_86] : memref<16x32xf32, #tpu.memory_space<vmem>>, vector<16x32xf32>
    tpu.vector_store %arg3[%c0_85, %c0_86], %220 {strides = array<i32>} : memref<16x32xf32, #tpu.memory_space<vmem>>, vector<16x32xf32>,
    return
  }
}

</mosaic_0001>

<bundles_post_ra>
// kernel: tree_reasoning_forward.1
= control target key start
LH: loop header
LB: loop body
LE: loop exit
PB: predicated region body
PF: predicated region fallthrough
CT: control target
= control target key end

     0   :  { %8 = vsyncpa [#allocation3], 0  ;;  %s2440_s0 = inlined_call_operand.hbm [shape: f32[16,32], index: 0, kind: input, shape index: {}]   ;;  %s2441_s1 = inlined_call_operand.hbm [shape: bf16[736,128], index: 1, kind: input, shape index: {}]   ;;  %s2442_s2 = inlined_call_operand.hbm [shape: f32[24,128], index: 2, kind: input, shape index: {}]   ;;  %s2443_s3 = inlined_call_operand.hbm [shape: f32[16,32], index: 3, kind: output, shape index: {}]  }
   0x1   :  { %9 = vsyncpa [#allocation6], 0 }
   0x2   :  { %10 = vsyncpa [#allocation4], 0  ;;  %s2133_s12 = smov [#allocation5]   ;;  %s2039_s16 = scalar_lea.hbm %s2441_s1, 5888 }
   0x3   :  { %s28_s13 = sshll.u32 %s2133_s12, 4  ;;  %p2040_p0 = scmp.ne.s32.totalorder %s2441_s1, %s2039_s16  ;;  %s29_s13 = int_to_ptr.vmem [resolvable:$true] %s28_s13 }
   0x4   :  { %p2043_p1 = scmp.lt.u32.totalorder %s2039_s16, %s2441_s1 }
   0x6   :  { %p2045_p2 = pnand %p2043_p1, %p2040_p0 }
   0x8   :  { %2048 = shalt.err (!%p2045_p2)
}
   0x9   :  { %s2049_s21 = scalar_lea.vmem %s29_s13, 5888  ;;  %p2054_p4 = scmp.lt.s32.totalorder %s29_s13, %s29_s13 }
   0xa   :  { %p2050_p3 = scmp.ne.s32.totalorder %s29_s13, %s2049_s21  ;;  %p2055_p5 = scmp.lt.s32.totalorder %s2049_s21, %s2049_s21 }
   0xc   :  { %p2056_p6 = por %p2055_p5, %p2054_p4 }
   0xe   :  { %p2057_p7 = pnand %p2056_p6, %p2050_p3 }
  0x10   :  { %2060 = shalt.err (!%p2057_p7)
}
  0x11   :  { %s2134_s22 = smov 64   ;;  %s2135_s23 = smov 4  }
  0x12   :  { %34 = dma.hbm_to_vmem [thread:$0]  %s2441_s1, 5888, %s29_s13, [#allocation6], %s2134_s22, %s2134_s22, %s2135_s23  }
  0x13   :  { %s2136_s26 = smov [#allocation2]   ;;  %s2061_s30 = scalar_lea.hbm %s2440_s0, 256 }
  0x14   :  { %s16_s27 = sshll.u32 %s2136_s26, 4  ;;  %p2062_p8 = scmp.ne.s32.totalorder %s2440_s0, %s2061_s30  ;;  %s17_s27 = int_to_ptr.vmem [resolvable:$true] %s16_s27 }
  0x15   :  { %p2065_p9 = scmp.lt.u32.totalorder %s2061_s30, %s2440_s0 }
  0x17   :  { %p2067_p10 = pnand %p2065_p9, %p2062_p8 }
  0x19   :  { %2070 = shalt.err (!%p2067_p10)
}
  0x1a   :  { %s2071_s8 = scalar_lea.vmem %s17_s27, 256  ;;  %p2076_p12 = scmp.lt.s32.totalorder %s17_s27, %s17_s27 }
  0x1b   :  { %p2072_p11 = scmp.ne.s32.totalorder %s17_s27, %s2071_s8  ;;  %p2077_p13 = scmp.lt.s32.totalorder %s2071_s8, %s2071_s8 }
  0x1d   :  { %p2078_p0 = por %p2077_p13, %p2076_p12 }
  0x1f   :  { %p2079_p1 = pnand %p2078_p0, %p2072_p11 }
  0x21   :  { %2082 = shalt.err (!%p2079_p1)
}
  0x22   :  { %s2137_s1 = smov 128   ;;  %s2138_s9 = smov 8  }
  0x23   :  { %22 = dma.hbm_to_vmem [thread:$0]  %s2440_s0, 256, %s17_s27, [#allocation3], %s2137_s1, %s2137_s1, %s2138_s9  }
  0x24   :  { %s2139_s12 = smov [#allocation7]   ;;  %s2083_s16 = scalar_lea.hbm %s2442_s2, 384 }
  0x25   :  { %s40_s13 = sshll.u32 %s2139_s12, 4  ;;  %p2084_p2 = scmp.ne.s32.totalorder %s2442_s2, %s2083_s16  ;;  %s41_s13 = int_to_ptr.vmem [resolvable:$true] %s40_s13 }
  0x26   :  { %p2087_p3 = scmp.lt.u32.totalorder %s2083_s16, %s2442_s2 }
  0x28   :  { %p2089_p4 = pnand %p2087_p3, %p2084_p2 }
  0x2a   :  { %2092 = shalt.err (!%p2089_p4)
}
  0x2b   :  { %s2093_s21 = scalar_lea.vmem %s41_s13, 384  ;;  %p2098_p6 = scmp.lt.s32.totalorder %s41_s13, %s41_s13 }
  0x2c   :  { %p2094_p5 = scmp.ne.s32.totalorder %s41_s13, %s2093_s21  ;;  %p2099_p7 = scmp.lt.s32.totalorder %s2093_s21, %s2093_s21 }
  0x2e   :  { %p2100_p8 = por %p2099_p7, %p2098_p6 }
  0x30   :  { %p2101_p9 = pnand %p2100_p8, %p2094_p5 }
  0x32   :  { %2104 = shalt.err (!%p2101_p9)
}
  0x33   :  { %46 = dma.hbm_to_vmem [thread:$0]  %s2442_s2, 384, %s41_s13, [#allocation6], %s2137_s1, %s2137_s1, %s2138_s9  }
  0x34   :  { %2127 = dma.done.wait [#allocation3], 256  }
  0x35   :  { %2128 = vsyncadd [#allocation3], 4294967040 }
  0x36   :  { %2129 = dma.done.wait [#allocation6], 6272  }
  0x37   :  { %2130 = vsyncadd [#allocation6], 4294961024  ;;  %v2140_v0 = vmov 0.0   ;;  %vm2141_vm0 = vmmov 0   ;;  %v1966_v1 = vld [vmem:[#allocation5] sm:$0xff]   ;;  %v1967_v2 = vld [vmem:[#allocation5 + $0x8] sm:$0xff]  }
  0x38   :  { %1743 = vmatprep.subr.bf16.mxu0 %v2140_v0  ;;  %1747 = vmatprep.mubr.msk.bf16.mxu0 %vm2141_vm0, %v2140_v0  ;;  %v164_v3 = vld [vmem:[#allocation2] sm:$0xff]  ;;  %v165_v4 = vld [vmem:[#allocation2 + $0x8] sm:$0xff]  ;;  %vm183_vm1 = vcmask 261120   ;;  %v1970_v16 = vld [vmem:[#allocation5 + $0x20] sm:$0xff]   ;;  %vm387_vm2 = vcmask 785408   ;;  %vm600_vm3 = vcmask 130048  }
  0x39   :  { %1751 = vmatprep.subr.bf16.mxu1 %v2140_v0  ;;  %1755 = vmatprep.mubr.msk.bf16.mxu1 %vm2141_vm0, %v2140_v0  ;;  %v166_v5 = vpack.c.bf16 %v165_v4, %v164_v3  ;;  %v1968_v6 = vld [vmem:[#allocation5 + $0x10] sm:$0xff]   ;;  %v1969_v7 = vld [vmem:[#allocation5 + $0x18] sm:$0xff]   ;;  %v1971_v17 = vld [vmem:[#allocation5 + $0x28] sm:$0xff]   ;;  %vm704_vm4 = vcmask 17408   ;;  %vm762_vm5 = vcmask 1040384   ;;  %vm763_vm6 = vcmask 1041408  }
  0x3a   :  { %1744 = vmatpush3.bf16.msra.mxu0 %v1966_v1  ;;  %1752 = vmatpush3.bf16.msra.mxu1 %v1968_v6  ;;  %v1574_v8 = vld [vmem:[#allocation7] ss:$0 sm:$0xff]  ;;  %v2230_v19 = vld [vmem:[#allocation5 + $0x38] sm:$0xff]   ;;  %v2234_v20 = vld [vmem:[#allocation5 + $0x40] sm:$0xff]   ;;  %vm758_vm7 = vcmask 23552   ;;  %vm1165_vm10 = vcmask 15360  }
  0x3b   :  { %1745 = vmatprep.subr.bf16.mxu0 %v2140_v0  ;;  %1753 = vmatprep.subr.bf16.mxu1 %v2140_v0  ;;  %v2227_v18 = vld [vmem:[#allocation5 + $0x30] sm:$0xff]   ;;  %v2238_v21 = vld [vmem:[#allocation5 + $0x48] sm:$0xff]   ;;  %v2260_v31 = vld [vmem:[#allocation5 + $0x58] sm:$0xff]   ;;  %s2143_s2 = smov [#allocation8]  }
  0x3c   :  { %v1578_v22 = vld [vmem:[#allocation7 + $0x1] ss:$0 sm:$0xff]  ;;  %v1582_v32 = vld [vmem:[#allocation7 + $0x2] ss:$0 sm:$0xff]  ;;  %v2284_v43 = vld [vmem:[#allocation5 + $0xf0] sm:$0x1] }
  0x3d   :  { %v2254_v30 = vld [vmem:[#allocation5 + $0x50] sm:$0xff]   ;;  %v1978_v44 = vld [vmem:[#allocation5 + $0x140] sm:$0xff]   ;;  %v1979_v45 = vld [vmem:[#allocation5 + $0x148] sm:$0xff]   ;;  %s1561_s23 = sshll.u32 %s2143_s2, 4  ;;  %s1562_s23 = int_to_ptr.vmem [resolvable:$true] %s1561_s23 }
  0x3e   :  { %1746 = vmatpush3.bf16.msra.mxu0 %v1967_v2  ;;  %1754 = vmatpush3.bf16.msra.mxu1 %v1969_v7  ;;  %v1980_v46 = vld [vmem:[#allocation5 + $0x60] sm:$0xff]   ;;  %v1981_v47 = vld [vmem:[#allocation5 + $0x68] sm:$0xff]   ;;  %v1982_v48 = vld [vmem:[#allocation5 + $0x70] sm:$0xff]   ;;  %s2105_s24 = scalar_lea.vmem %s1562_s23, 256  ;;  %p2110_p11 = scmp.lt.s32.totalorder %s1562_s23, %s1562_s23 }
  0x3f   :  { %1759 = vmatprep.subr.bf16.mxu0 %v2140_v0  ;;  %1767 = vmatprep.subr.bf16.mxu1 %v2140_v0  ;;  %v1983_v49 = vld [vmem:[#allocation5 + $0x78] sm:$0xff]   ;;  %v1984_v50 = vld [vmem:[#allocation5 + $0x80] sm:$0xff]   ;;  %v1985_v51 = vld [vmem:[#allocation5 + $0x88] sm:$0xff]   ;;  %p2106_p10 = scmp.ne.s32.totalorder %s1562_s23, %s2105_s24  ;;  %p2111_p12 = scmp.lt.s32.totalorder %s2105_s24, %s2105_s24 }
  0x41   :  { %1748 = vmatmul.mubr.msk.bf16.vlgmr.msra.gmra.mrb[0].mxu0 %vm183_vm1, %v166_v5  ;;  %p2112_p13 = por %p2111_p12, %p2110_p11 }
  0x42   :  { %1763 = vmatprep.mubr.msk.bf16.mxu0 %vm2141_vm0, %v2140_v0  ;;  %1760 = vmatpush3.bf16.msra.mxu0 %v1970_v16  ;;  %v1595_v16 = vld [vmem:[#allocation7 + $0x4] ss:$0 sm:$0xff] }
  0x43   :  { %1761 = vmatprep.subr.bf16.mxu0 %v2140_v0  ;;  %p2113_p0 = pnand %p2112_p13, %p2106_p10 }
  0x46   :  { %1762 = vmatpush3.bf16.msra.mxu0 %v1971_v17 }
  0x47   :  { %1783 = vmatprep.subr.bf16.mxu0 %v2140_v0 }
 0x114   :  { %v221_v9 = vpop.f32.mrb[0].mxu0 }
 0x115   :  { %v1749_v10 = vpop.f32.mrb[1].mxu0  ;;  %v222_v12 = vadd.f32 %v1574_v8, %v221_v9 }
 0x116   :  { %v224_v11 = vpop.f32.mrb[2].mxu0 }
 0x117   :  { %v225_v13 = vadd.f32 %v1574_v8, %v224_v11  ;;  %v1750_v14 = vpop.f32.mrb[3].mxu0 }
 0x119   :  { %v2219_v15 = vpack.c.bf16 %v225_v13, %v222_v12  ;;  %v1594_v12 = vld [vmem:[#allocation7 + $0x3] ss:$0 sm:$0xff] }
 0x11b   :  { %1756 = vmatmul.mubr.msk.bf16.vlgmr.msra.gmra.mrb[0].mxu1 %vm183_vm1, %v2219_v15 }
 0x11c   :  { %1779 = vmatprep.mubr.msk.bf16.mxu1 %vm2141_vm0, %v2140_v0  ;;  %1768 = vmatpush3.bf16.msra.mxu1 %v2227_v18 }
 0x11d   :  { %1769 = vmatprep.subr.bf16.mxu1 %v2140_v0 }
 0x120   :  { %1770 = vmatpush3.bf16.msra.mxu1 %v2230_v19 }
 0x121   :  { %1771 = vmatprep.subr.bf16.mxu1 %v2140_v0 }
 0x124   :  { %1772 = vmatpush3.bf16.msra.mxu1 %v2234_v20 }
 0x125   :  { %1773 = vmatprep.subr.bf16.mxu1 %v2140_v0 }
 0x128   :  { %1774 = vmatpush3.bf16.msra.mxu1 %v2238_v21 }
 0x129   :  { %1775 = vmatprep.subr.bf16.mxu1 %v2140_v0 }
 0x12c   :  { %1776 = vmatpush3.bf16.msra.mxu1 %v2254_v30 }
 0x12d   :  { %1777 = vmatprep.subr.bf16.mxu1 %v2140_v0 }
 0x130   :  { %1778 = vmatpush3.bf16.msra.mxu1 %v2260_v31 }
 0x131   :  { %1799 = vmatprep.subr.bf16.mxu1 %v2140_v0 }
 0x1ee   :  { %v282_v23 = vpop.f32.mrb[0].mxu1 }
 0x1ef   :  { %v1757_v24 = vpop.f32.mrb[1].mxu1  ;;  %v283_v26 = vadd.f32 %v1578_v22, %v282_v23 }
 0x1f0   :  { %v285_v25 = vpop.f32.mrb[2].mxu1 }
 0x1f1   :  { %v286_v27 = vadd.f32 %v1578_v22, %v285_v25  ;;  %v1758_v28 = vpop.f32.mrb[3].mxu1 }
 0x1f3   :  { %v289_v29 = vpack.c.bf16 %v286_v27, %v283_v26 }
 0x1f5   :  { %1764 = vmatmul.mubr.msk.bf16.vlgmr.msra.gmra.mrb[4].mxu0 %vm183_vm1, %v289_v29 }
 0x1f6   :  { %1784 = vmatpush3.bf16.msra.mxu0 %v2227_v18  ;;  %1795 = vmatprep.mubr.msk.bf16.mxu0 %vm2141_vm0, %v2140_v0 }
 0x1f7   :  { %1785 = vmatprep.subr.bf16.mxu0 %v2140_v0 }
 0x1fa   :  { %1786 = vmatpush3.bf16.msra.mxu0 %v2230_v19 }
 0x1fb   :  { %1787 = vmatprep.subr.bf16.mxu0 %v2140_v0 }
 0x1fe   :  { %1788 = vmatpush3.bf16.msra.mxu0 %v2234_v20 }
 0x1ff   :  { %1789 = vmatprep.subr.bf16.mxu0 %v2140_v0 }
 0x202   :  { %1790 = vmatpush3.bf16.msra.mxu0 %v2238_v21 }
 0x203   :  { %1791 = vmatprep.subr.bf16.mxu0 %v2140_v0 }
 0x206   :  { %1792 = vmatpush3.bf16.msra.mxu0 %v2254_v30 }
 0x207   :  { %1793 = vmatprep.subr.bf16.mxu0 %v2140_v0 }
 0x20a   :  { %1794 = vmatpush3.bf16.msra.mxu0 %v2260_v31 }
 0x20b   :  { %1815 = vmatprep.subr.bf16.mxu0 %v2140_v0 }
 0x2c8   :  { %v343_v33 = vpop.f32.mrb[4].mxu0 }
 0x2c9   :  { %v2266_v34 = vadd.f32 %v1582_v32, %v343_v33  ;;  %v1765_v35 = vpop.f32.mrb[5].mxu0 }
 0x2ca   :  { %v346_v36 = vpop.f32.mrb[6].mxu0 }
 0x2cb   :  { %v2268_v37 = vadd.f32 %v1582_v32, %v346_v36  ;;  %v1766_v38 = vpop.f32.mrb[7].mxu0  ;;  %v432_v39 = vmul.f32 %v2266_v34, %v2266_v34 }
 0x2cd   :  { %v350_v40 = vpack.c.bf16 %v2268_v37, %v2266_v34  ;;  %v433_v41 = vmul.f32 %v2268_v37, %v2268_v37 }
 0x2cf   :  { %v434_v42 = vpack.c.bf16 %v433_v41, %v432_v39  ;;  %1780 = vmatmul.mubr.msk.bf16.vlgmr.msra.gmra.mrb[4].mxu1 %vm387_vm2, %v350_v40  ;;  %v1605_v39 = vld [vmem:[#allocation7 + $0xf] ss:$0 sm:$0xff] }
 0x2d0   :  { %1811 = vmatprep.mubr.msk.bf16.mxu1 %vm2141_vm0, %v2140_v0  ;;  %1800 = vmatpush3.bf16.msra.mxu1 %v1980_v46 }
 0x2d1   :  { %1796 = vmatmul.mubr.msk.bf16.vlgmr.msra.gmra.mrb[8].mxu0 %vm387_vm2, %v434_v42  ;;  %1801 = vmatprep.subr.bf16.mxu1 %v2140_v0 }
 0x2d2   :  { %1816 = vmatpush3.bf16.msra.mxu0 %v2219_v15  ;;  %1817 = vmatprep.mubr.msk.bf16.mxu0 %vm2141_vm0, %v2140_v0 }
 0x2d3   :  { %1821 = vmatprep.subr.bf16.mxu0 %v2140_v0 }
 0x2d4   :  { %1802 = vmatpush3.bf16.msra.mxu1 %v1981_v47  ;;  %v1596_v47 = vld [vmem:[#allocation7 + $0x5] ss:$0 sm:$0xff] }
 0x2d5   :  { %1803 = vmatprep.subr.bf16.mxu1 %v2140_v0 }
 0x2d8   :  { %1804 = vmatpush3.bf16.msra.mxu1 %v1982_v48 }
 0x2d9   :  { %1818 = vmatmul.mubr.msk.bf16.vlgmr.msra.gmra.mrb[12].mxu0 %vm600_vm3, %v2284_v43  ;;  %1805 = vmatprep.subr.bf16.mxu1 %v2140_v0 }
 0x2da   :  { %1825 = vmatprep.mubr.msk.bf16.mxu0 %vm2141_vm0, %v2140_v0  ;;  %1822 = vmatpush3.bf16.msra.mxu0 %v1978_v44 }
 0x2db   :  { %1823 = vmatprep.subr.bf16.mxu0 %v2140_v0 }
 0x2dc   :  { %1806 = vmatpush3.bf16.msra.mxu1 %v1983_v49 }
 0x2dd   :  { %1807 = vmatprep.subr.bf16.mxu1 %v2140_v0 }
 0x2de   :  { %1824 = vmatpush3.bf16.msra.mxu0 %v1979_v45 }
 0x2df   :  { %1829 = vmatprep.subr.bf16.mxu0 %v2140_v0 }
 0x2e0   :  { %1808 = vmatpush3.bf16.msra.mxu1 %v1984_v50 }
 0x2e1   :  { %1809 = vmatprep.subr.bf16.mxu1 %v2140_v0 }
 0x2e4   :  { %1810 = vmatpush3.bf16.msra.mxu1 %v1985_v51 }
 0x2e5   :  { %1835 = vmatprep.subr.bf16.mxu1 %v2140_v0 }
 0x3a2   :  { %v425_v52 = vpop.f32.mrb[4].mxu1 }
 0x3a3   :  { %v479_v53 = vmul.f32 %v425_v52, %v425_v52  ;;  %v1781_v54 = vpop.f32.mrb[5].mxu1  ;;  %v485_v10 = vsub.f32 %v2266_v34, %v425_v52 }
 0x3a4   :  { %v428_v55 = vpop.f32.mrb[6].mxu1  ;;  %v472_v56 = vpop.f32.mrb[8].mxu0 }
 0x3a5   :  { %v480_v57 = vmul.f32 %v428_v55, %v428_v55  ;;  %v481_v58 = vsub.f32 %v472_v56, %v479_v53  ;;  %v1782_v59 = vpop.f32.mrb[7].mxu1  ;;  %v1797_v60 = vpop.f32.mrb[9].mxu0  ;;  %v486_v13 = vsub.f32 %v2268_v37, %v428_v55 }
 0x3a6   :  { %v475_v61 = vpop.f32.mrb[10].mxu0  ;;  %v2142_v60 = vmov 65535  }
 0x3a7   :  { %v483_v62 = vmax.f32 %v481_v58, 0.0  ;;  %v482_v63 = vsub.f32 %v475_v61, %v480_v57  ;;  %v1798_v1 = vpop.f32.mrb[11].mxu0  ;;  %v764_v61 = vsel %vm762_vm5, 4294967295, %v2142_v60 }
 0x3a8   :  { %v1986_v1 = vld [vmem:[#allocation5 + $0x90] sm:$0xff]  }
 0x3a9   :  { %v487_v2 = vadd.f32 1e-05, %v483_v62  ;;  %v484_v3 = vmax.f32 %v482_v63, 0.0  ;;  %v118_v62 = vld [vmem:[#allocation5 + $0xf8] sm:$0x3]  ;;  %v2320_v63 = vsel %vm763_vm6, %v764_v61, 0 }
 0x3ab   :  { %2009 = vrsqrt.f32 %v487_v2  ;;  %v488_v4 = vadd.f32 1e-05, %v484_v3  ;;  %v1987_v2 = vld [vmem:[#allocation5 + $0x98] sm:$0xff]   ;;  %v1988_v3 = vld [vmem:[#allocation5 + $0xa0] sm:$0xff]  }
 0x3ac   :  { %v638_v5 = vpop.f32.mrb[12].mxu0 }
 0x3ad   :  { %2011 = vrsqrt.f32 %v488_v4  ;;  %v644_v6 = vpack.c.bf16 %v638_v5, %v638_v5  ;;  %v1819_v7 = vpop.f32.mrb[13].mxu0  ;;  %v1989_v4 = vld [vmem:[#allocation5 + $0xa8] sm:$0xff]   ;;  %v1990_v5 = vld [vmem:[#allocation5 + $0xb0] sm:$0xff]  }
 0x3ae   :  { %v641_v8 = vpop.f32.mrb[14].mxu0 }
 0x3af   :  { %v1820_v9 = vpop.f32.mrb[15].mxu0  ;;  %1826 = vmatmul.mubr.msk.bf16.vlgmr.msra.gmra.mrb[16].mxu0 %vm183_vm1, %v644_v6 }
 0x3b0   :  { %1831 = vmatprep.mubr.msk.bf16.mxu0 %vm2141_vm0, %v2140_v0 }
 0x3b5   :  { %v2010_v11 = vpop.eup %2009 }
 0x3b6   :  { %v491_v14 = vmul.f32 %v2010_v11, %v485_v10 }
 0x3b7   :  { %v2012_v15 = vpop.eup %2011 }
 0x3b8   :  { %v497_v17 = vmul.f32 %v1594_v12, %v491_v14  ;;  %v492_v22 = vmul.f32 %v2012_v15, %v486_v13  ;;  %v1991_v14 = vld [vmem:[#allocation5 + $0xb8] sm:$0xff]  }
 0x3ba   :  { %v503_v23 = vadd.f32 %v1595_v16, %v497_v17  ;;  %v498_v24 = vmul.f32 %v1594_v12, %v492_v22 }
 0x3bc   :  { %v507_v25 = vmul.f32 0.70710677, %v503_v23  ;;  %v504_v26 = vadd.f32 %v1595_v16, %v498_v24  ;;  %v505_v33 = vmul.f32 0.5, %v503_v23 }
 0x3be   :  { %v508_v27 = vmul.f32 0.70710677, %v504_v26  ;;  %2013 = verf.f32 %v507_v25  ;;  %v506_v34 = vmul.f32 0.5, %v504_v26 }
 0x3c0   :  { %2015 = verf.f32 %v508_v27 }
 0x3c8   :  { %v2014_v28 = vpop.eup %2013 }
 0x3c9   :  { %v511_v29 = vadd.f32 1.0, %v2014_v28 }
 0x3ca   :  { %v2016_v32 = vpop.eup %2015 }
 0x3cb   :  { %v512_v35 = vadd.f32 1.0, %v2016_v32  ;;  %v513_v36 = vmul.f32 %v511_v29, %v505_v33  ;;  %v1995_v33 = vld [vmem:[#allocation5 + $0xd8] sm:$0xff]  }
 0x3cd   :  { %v514_v37 = vmul.f32 %v512_v35, %v506_v34  ;;  %v1996_v34 = vld [vmem:[#allocation5 + $0xe0] sm:$0xff]   ;;  %v1997_v35 = vld [vmem:[#allocation5 + $0xe8] sm:$0xff]  }
 0x3cf   :  { %v515_v38 = vpack.c.bf16 %v514_v37, %v513_v36 }
 0x3d1   :  { %1812 = vmatmul.mubr.msk.bf16.vlgmr.msra.gmra.mrb[8].mxu1 %vm387_vm2, %v515_v38 }
 0x3d2   :  { %1837 = vmatprep.mubr.msk.bf16.mxu1 %vm2141_vm0, %v2140_v0 }
 0x482   :  { %v698_v40 = vpop.f32.mrb[16].mxu0 }
 0x483   :  { %v699_v41 = vadd.f32 %v1605_v39, %v698_v40  ;;  %v1827_v42 = vpop.f32.mrb[17].mxu0 }
 0x484   :  { %v701_v44 = vpop.f32.mrb[18].mxu0 }
 0x485   :  { %v1828_v45 = vpop.f32.mrb[19].mxu0  ;;  %v705_v46 = vsel %vm704_vm4, %v699_v41, -inf }
 0x486   :  { %706 = vmax.xlane.f32.xlu0 %v705_v46 }
 0x4a4   :  { %v593_v48 = vpop.f32.mrb[8].mxu1 }
 0x4a5   :  { %v1813_v49 = vpop.f32.mrb[9].mxu1  ;;  %v2307_v51 = vadd.f32 %v1596_v47, %v593_v48 }
 0x4a6   :  { %v596_v50 = vpop.f32.mrb[10].mxu1 }
 0x4a7   :  { %v2309_v52 = vadd.f32 %v1596_v47, %v596_v50  ;;  %v1814_v53 = vpop.f32.mrb[11].mxu1 }
 0x4a8   :  { %v1621_v53 = vld [vmem:[#allocation7 + $0x7] ss:$0 sm:$0xff] }
 0x4a9   :  { %v716_v54 = vpack.c.bf16 %v2309_v52, %v2307_v51 }
 0x4ab   :  { %1830 = vmatpush3.bf16.msra.mxu0 %v716_v54 }
 0x4ac   :  { %1841 = vmatprep.subr.bf16.mxu0 %v2140_v0 }
 0x4ae   :  { %1832 = vmatmul.mubr.msk.bf16.vlgmr.msra.gmra.mrb[20].mxu0 %vm600_vm3, %v2284_v43  ;;  %v2323_v43 = vand.u32 %v2320_v63, %v118_v62 }
 0x4af   :  { %1853 = vmatprep.mubr.msk.bf16.mxu0 %vm2141_vm0, %v2140_v0  ;;  %1842 = vmatpush3.bf16.msra.mxu0 %v1986_v1 }
 0x4b0   :  { %1836 = vmatpush3.bf16.msra.mxu1 %v2323_v43  ;;  %1843 = vmatprep.subr.bf16.mxu0 %v2140_v0 }
 0x4b1   :  { %1857 = vmatprep.subr.bf16.mxu1 %v2140_v0 }
 0x4b3   :  { %1844 = vmatpush3.bf16.msra.mxu0 %v1987_v2  ;;  %v133_v2 = vld [vmem:[#allocation5 + $0x138] sm:$0x3] }
 0x4b4   :  { %1845 = vmatprep.subr.bf16.mxu0 %v2140_v0 }
 0x4b7   :  { %1846 = vmatpush3.bf16.msra.mxu0 %v1988_v3  ;;  %v1100_v3 = vand.u32 %v2320_v63, %v133_v2 }
 0x4b8   :  { %1847 = vmatprep.subr.bf16.mxu0 %v2140_v0 }
 0x4bb   :  { %1848 = vmatpush3.bf16.msra.mxu0 %v1989_v4  ;;  %v1623_v4 = vld [vmem:[#allocation7 + $0x10] ss:$0 sm:$0xff] }
 0x4bc   :  { %1849 = vmatprep.subr.bf16.mxu0 %v2140_v0 }
 0x4bf   :  { %1850 = vmatpush3.bf16.msra.mxu0 %v1990_v5 }
 0x4c0   :  { %1851 = vmatprep.subr.bf16.mxu0 %v2140_v0 }
 0x4c3   :  { %1852 = vmatpush3.bf16.msra.mxu0 %v1991_v14 }
 0x4c4   :  { %1873 = vmatprep.subr.bf16.mxu0 %v2140_v0 }
 0x513   :  { %v707_v55 = vpop.xlane.xlu0 %706 }
 0x514   :  { %v708_v56 = vsub.f32 %v699_v41, %v707_v55  ;;  %v1622_v55 = vld [vmem:[#allocation7 + $0x8] ss:$0 sm:$0xff] }
 0x516   :  { %v709_v57 = vmul.f32 1.442695, %v708_v56 }
 0x518   :  { %2017 = vpow2.f32 %v709_v57 }
 0x522   :  { %v2018_v58 = vpop.eup %2017 }
 0x523   :  { %v711_v59 = vsel %vm704_vm4, %v2018_v58, 0.0 }
 0x524   :  { %712 = vadd.xlane.f32.xlu0 %v711_v59 }
 0x581   :  { %v751_v6 = vpop.f32.mrb[20].mxu0 }
 0x582   :  { %v1833_v7 = vpop.f32.mrb[21].mxu0 }
 0x583   :  { %v754_v8 = vpop.f32.mrb[22].mxu0 }
 0x584   :  { %v1834_v9 = vpop.f32.mrb[23].mxu0 }
 0x5b1   :  { %v713_v10 = vpop.xlane.xlu0 %712 }
 0x5b2   :  { %2019 = vrcp.f32 %v713_v10 }
 0x5bc   :  { %v2020_v11 = vpop.eup %2019 }
 0x5bd   :  { %v2332_v12 = vmul.f32 %v2020_v11, %v2018_v58 }
 0x5bf   :  { %v757_v13 = vpack.c.bf16 %v2332_v12, %v2332_v12 }
 0x5c1   :  { %1838 = vmatmul.mubr.msk.bf16.vlgmr.msra.gmra.mrb[12].mxu1 %vm758_vm7, %v757_v13 }
 0x5c2   :  { %1858 = vmatpush3.bf16.msra.mxu1 %v2227_v18  ;;  %1869 = vmatprep.mubr.msk.bf16.mxu1 %vm2141_vm0, %v2140_v0 }
 0x5c3   :  { %1859 = vmatprep.subr.bf16.mxu1 %v2140_v0 }
 0x5c6   :  { %1860 = vmatpush3.bf16.msra.mxu1 %v2230_v19 }
 0x5c7   :  { %1861 = vmatprep.subr.bf16.mxu1 %v2140_v0 }
 0x5ca   :  { %1862 = vmatpush3.bf16.msra.mxu1 %v2234_v20 }
 0x5cb   :  { %1863 = vmatprep.subr.bf16.mxu1 %v2140_v0 }
 0x5ce   :  { %1864 = vmatpush3.bf16.msra.mxu1 %v2238_v21 }
 0x5cf   :  { %1865 = vmatprep.subr.bf16.mxu1 %v2140_v0 }
 0x5d2   :  { %1866 = vmatpush3.bf16.msra.mxu1 %v2254_v30 }
 0x5d3   :  { %1867 = vmatprep.subr.bf16.mxu1 %v2140_v0 }
 0x5d6   :  { %1868 = vmatpush3.bf16.msra.mxu1 %v2260_v31 }
 0x5d7   :  { %1889 = vmatprep.subr.bf16.mxu1 %v2140_v0 }
 0x694   :  { %v803_v15 = vpop.f32.mrb[12].mxu1 }
 0x695   :  { %v809_v16 = vmul.f32 %v803_v15, %v751_v6  ;;  %v1839_v17 = vpop.f32.mrb[13].mxu1 }
 0x696   :  { %v806_v22 = vpop.f32.mrb[14].mxu1 }
 0x697   :  { %v810_v23 = vpack.c.bf16 %v809_v16, %v809_v16  ;;  %v1840_v24 = vpop.f32.mrb[15].mxu1 }
 0x699   :  { %1854 = vmatmul.mubr.msk.bf16.vlgmr.msra.gmra.mrb[24].mxu0 %vm387_vm2, %v810_v23 }
 0x69a   :  { %1874 = vmatpush3.bf16.msra.mxu0 %v2227_v18  ;;  %1885 = vmatprep.mubr.msk.bf16.mxu0 %vm2141_vm0, %v2140_v0  ;;  %v1611_v18 = vld [vmem:[#allocation7 + $0x6] ss:$0 sm:$0xff] }
 0x69b   :  { %1875 = vmatprep.subr.bf16.mxu0 %v2140_v0 }
 0x69e   :  { %1876 = vmatpush3.bf16.msra.mxu0 %v2230_v19 }
 0x69f   :  { %1877 = vmatprep.subr.bf16.mxu0 %v2140_v0 }
 0x6a2   :  { %1878 = vmatpush3.bf16.msra.mxu0 %v2234_v20 }
 0x6a3   :  { %1879 = vmatprep.subr.bf16.mxu0 %v2140_v0 }
 0x6a6   :  { %1880 = vmatpush3.bf16.msra.mxu0 %v2238_v21  ;;  %v1992_v21 = vld [vmem:[#allocation5 + $0xc0] sm:$0xff]  }
 0x6a7   :  { %1881 = vmatprep.subr.bf16.mxu0 %v2140_v0 }
 0x6aa   :  { %1882 = vmatpush3.bf16.msra.mxu0 %v2254_v30  ;;  %v1993_v30 = vld [vmem:[#allocation5 + $0xc8] sm:$0xff]  }
 0x6ab   :  { %1883 = vmatprep.subr.bf16.mxu0 %v2140_v0 }
 0x6ae   :  { %1884 = vmatpush3.bf16.msra.mxu0 %v2260_v31  ;;  %v1994_v31 = vld [vmem:[#allocation5 + $0xd0] sm:$0xff]  }
 0x6af   :  { %1905 = vmatprep.subr.bf16.mxu0 %v2140_v0 }
 0x76c   :  { %v888_v19 = vpop.f32.mrb[24].mxu0 }
 0x76d   :  { %v889_v25 = vadd.f32 %v1611_v18, %v888_v19  ;;  %v1855_v26 = vpop.f32.mrb[25].mxu0  ;;  %v1633_v19 = vld [vmem:[#allocation7 + $0x11] ss:$0 sm:$0xff] }
 0x76e   :  { %v891_v27 = vpop.f32.mrb[26].mxu0 }
 0x76f   :  { %v894_v20 = vpack.c.bf16 %v889_v25, %v889_v25  ;;  %v938_v28 = vmul.f32 %v889_v25, %v889_v25  ;;  %v1856_v29 = vpop.f32.mrb[27].mxu0 }
 0x771   :  { %v939_v32 = vpack.c.bf16 %v938_v28, %v938_v28  ;;  %1870 = vmatmul.mubr.msk.bf16.vlgmr.msra.gmra.mrb[16].mxu1 %vm387_vm2, %v894_v20 }
 0x772   :  { %1901 = vmatprep.mubr.msk.bf16.mxu1 %vm2141_vm0, %v2140_v0  ;;  %1890 = vmatpush3.bf16.msra.mxu1 %v1992_v21  ;;  %v1998_v21 = vld [vmem:[#allocation5 + $0x130] sm:$0xff]  }
 0x773   :  { %1886 = vmatmul.mubr.msk.bf16.vlgmr.msra.gmra.mrb[28].mxu0 %vm387_vm2, %v939_v32  ;;  %1891 = vmatprep.subr.bf16.mxu1 %v2140_v0 }
 0x774   :  { %1907 = vmatprep.mubr.msk.bf16.mxu0 %vm2141_vm0, %v2140_v0  ;;  %1906 = vmatpush3.bf16.msra.mxu0 %v1100_v3 }
 0x775   :  { %1917 = vmatprep.subr.bf16.mxu0 %v2140_v0 }
 0x776   :  { %1892 = vmatpush3.bf16.msra.mxu1 %v1993_v30  ;;  %v1999_v30 = vld [vmem:[#allocation5 + $0x100] sm:$0xff]  }
 0x777   :  { %1893 = vmatprep.subr.bf16.mxu1 %v2140_v0 }
 0x77a   :  { %1894 = vmatpush3.bf16.msra.mxu1 %v1994_v31  ;;  %v2000_v31 = vld [vmem:[#allocation5 + $0x108] sm:$0xff]  }
 0x77b   :  { %1895 = vmatprep.subr.bf16.mxu1 %v2140_v0 }
 0x77e   :  { %1896 = vmatpush3.bf16.msra.mxu1 %v1995_v33  ;;  %v2001_v33 = vld [vmem:[#allocation5 + $0x110] sm:$0xff]  }
 0x77f   :  { %1897 = vmatprep.subr.bf16.mxu1 %v2140_v0 }
 0x782   :  { %1898 = vmatpush3.bf16.msra.mxu1 %v1996_v34 }
 0x783   :  { %1899 = vmatprep.subr.bf16.mxu1 %v2140_v0 }
 0x786   :  { %1900 = vmatpush3.bf16.msra.mxu1 %v1997_v35 }
 0x787   :  { %1911 = vmatprep.subr.bf16.mxu1 %v2140_v0 }
 0x844   :  { %v932_v36 = vpop.f32.mrb[16].mxu1 }
 0x845   :  { %v983_v37 = vmul.f32 %v932_v36, %v932_v36  ;;  %v1871_v38 = vpop.f32.mrb[17].mxu1  ;;  %v986_v49 = vsub.f32 %v889_v25, %v932_v36 }
 0x846   :  { %v935_v39 = vpop.f32.mrb[18].mxu1  ;;  %v977_v40 = vpop.f32.mrb[28].mxu0 }
 0x847   :  { %v984_v41 = vsub.f32 %v977_v40, %v983_v37  ;;  %v1872_v42 = vpop.f32.mrb[19].mxu1  ;;  %v1887_v44 = vpop.f32.mrb[29].mxu0  ;;  %v2003_v39 = vld [vmem:[#allocation5 + $0x120] sm:$0xff]   ;;  %v2004_v40 = vld [vmem:[#allocation5 + $0x128] sm:$0xff]  }
 0x848   :  { %v980_v45 = vpop.f32.mrb[30].mxu0 }
 0x849   :  { %v985_v46 = vmax.f32 %v984_v41, 0.0  ;;  %v1888_v47 = vpop.f32.mrb[31].mxu0  ;;  %v2005_v41 = vld [vmem:[#allocation5 + $0x150] sm:$0xff]  }
 0x84b   :  { %v987_v48 = vadd.f32 1e-05, %v985_v46 }
 0x84d   :  { %2021 = vrsqrt.f32 %v987_v48 }
 0x857   :  { %v2022_v50 = vpop.eup %2021 }
 0x858   :  { %v989_v54 = vmul.f32 %v2022_v50, %v986_v49  ;;  %v2006_v50 = vld [vmem:[#allocation5 + $0x158] sm:$0xff]  }
 0x85a   :  { %v994_v56 = vmul.f32 %v1621_v53, %v989_v54 }
 0x85c   :  { %v999_v57 = vadd.f32 %v1622_v55, %v994_v56 }
 0x85e   :  { %v1001_v58 = vmul.f32 0.70710677, %v999_v57  ;;  %v1000_v60 = vmul.f32 0.5, %v999_v57 }
 0x860   :  { %2023 = verf.f32 %v1001_v58 }
 0x86a   :  { %v2024_v59 = vpop.eup %2023 }
 0x86b   :  { %v1003_v61 = vadd.f32 1.0, %v2024_v59 }
 0x86d   :  { %v1004_v62 = vmul.f32 %v1003_v61, %v1000_v60 }
 0x86f   :  { %v1005_v1 = vpack.c.bf16 %v1004_v62, %v1004_v62 }
 0x871   :  { %1902 = vmatmul.mubr.msk.bf16.vlgmr.msra.gmra.mrb[20].mxu1 %vm387_vm2, %v1005_v1 }
 0x872   :  { %1913 = vmatprep.mubr.msk.bf16.mxu1 %vm2141_vm0, %v2140_v0 }
 0x944   :  { %v1083_v5 = vpop.f32.mrb[20].mxu1 }
 0x945   :  { %v1084_v6 = vadd.f32 %v1623_v4, %v1083_v5  ;;  %v1903_v7 = vpop.f32.mrb[21].mxu1 }
 0x946   :  { %v1086_v8 = vpop.f32.mrb[22].mxu1  ;;  %v2007_v7 = vld [vmem:[#allocation5 + $0x160] sm:$0xff]  }
 0x947   :  { %v1631_v9 = vmul.f32 -1.442695, %v1084_v6  ;;  %v1904_v10 = vpop.f32.mrb[23].mxu1  ;;  %v2008_v8 = vld [vmem:[#allocation5 + $0x168] sm:$0xff]  }
 0x949   :  { %2025 = vpow2.f32 %v1631_v9 }
 0x953   :  { %v2026_v11 = vpop.eup %2025 }
 0x954   :  { %v1092_v13 = vadd.f32 1.0, %v2026_v11 }
 0x956   :  { %2027 = vrcp.f32 %v1092_v13 }
 0x960   :  { %v2028_v14 = vpop.eup %2027 }
 0x961   :  { %v1095_v15 = vpack.c.bf16 %v2028_v14, %v2028_v14 }
 0x963   :  { %1908 = vmatmul.mubr.msk.bf16.vlgmr.msra.gmra.mrb[32].mxu0 %vm758_vm7, %v1095_v15 }
 0x964   :  { %1918 = vmatpush3.bf16.msra.mxu0 %v2323_v43  ;;  %1919 = vmatprep.mubr.msk.bf16.mxu0 %vm2141_vm0, %v2140_v0 }
 0x965   :  { %1939 = vmatprep.subr.bf16.mxu0 %v2140_v0 }
 0xa36   :  { %v1136_v63 = vpop.f32.mrb[32].mxu0 }
 0xa37   :  { %v1137_v16 = vadd.f32 1.0, %v1136_v63  ;;  %v1909_v17 = vpop.f32.mrb[33].mxu0 }
 0xa38   :  { %v1139_v22 = vpop.f32.mrb[34].mxu0 }
 0xa39   :  { %v1142_v23 = vmul.f32 0.33333334, %v1137_v16  ;;  %v1910_v24 = vpop.f32.mrb[35].mxu0 }
 0xa3b   :  { %v1143_v18 = vsel %vm704_vm4, %v1142_v23, -inf }
 0xa3c   :  { %1144 = vmax.xlane.f32.xlu1 %v1143_v18 }
 0xac9   :  { %v1145_v25 = vpop.xlane.xlu1 %1144 }
 0xaca   :  { %vm1146_vm8 = vcmp.ge.f32.partialorder %v1142_v23, %v1145_v25 }
 0xacb   :  { %v1151_v26 = vsel %vm1146_vm8, %v1633_v19, 3.0 }
 0xacc   :  { %v1152_v43 = vsel %vm704_vm4, %v1151_v26, inf }
 0xacd   :  { %1153 = vmin.xlane.f32.xlu1 %v1152_v43 }
 0xb5a   :  { %v1154_v27 = vpop.xlane.xlu1 %1153 }
 0xb5b   :  { %vm1155_vm9 = vcmp.eq.f32.partialorder %v1633_v19, %v1154_v27  ;;  %v1649_v27 = vld [vmem:[#allocation7 + $0xa] ss:$0 sm:$0xff] }
 0xb5c   :  { %v1634_v20 = vsel %vm1155_vm9, 1.0, %v2140_v0 }
 0xb5d   :  { %v1158_v28 = vmul.f32 %v1634_v20, %v2332_v12  ;;  %v2002_v12 = vld [vmem:[#allocation5 + $0x118] sm:$0xff]  }
 0xb5f   :  { %v1159_v29 = vpack.c.bf16 %v1158_v28, %v1158_v28 }
 0xb61   :  { %v1170_v32 = vsel %vm762_vm5, %v1159_v29, 0 }
 0xb62   :  { %1912 = vmatpush3.bf16.msra.mxu1 %v1170_v32 }
 0xb63   :  { %1923 = vmatprep.subr.bf16.mxu1 %v2140_v0 }
 0xb65   :  { %1914 = vmatmul.mubr.msk.bf16.vlgmr.msra.gmra.mrb[24].mxu1 %vm1165_vm10, %v1998_v21 }
 0xb66   :  { %1935 = vmatprep.mubr.msk.bf16.mxu1 %vm2141_vm0, %v2140_v0  ;;  %1924 = vmatpush3.bf16.msra.mxu1 %v1999_v30  ;;  %v1650_v30 = vld [vmem:[#allocation7 + $0xb] ss:$0 sm:$0xff] }
 0xb67   :  { %1925 = vmatprep.subr.bf16.mxu1 %v2140_v0 }
 0xb6a   :  { %1926 = vmatpush3.bf16.msra.mxu1 %v2000_v31 }
 0xb6b   :  { %1927 = vmatprep.subr.bf16.mxu1 %v2140_v0 }
 0xb6e   :  { %1928 = vmatpush3.bf16.msra.mxu1 %v2001_v33 }
 0xb6f   :  { %1929 = vmatprep.subr.bf16.mxu1 %v2140_v0 }
 0xb72   :  { %1930 = vmatpush3.bf16.msra.mxu1 %v2002_v12 }
 0xb73   :  { %1931 = vmatprep.subr.bf16.mxu1 %v2140_v0 }
 0xb76   :  { %1932 = vmatpush3.bf16.msra.mxu1 %v2003_v39 }
 0xb77   :  { %1933 = vmatprep.subr.bf16.mxu1 %v2140_v0 }
 0xb7a   :  { %1934 = vmatpush3.bf16.msra.mxu1 %v2004_v40  ;;  %v2037_v40 = vld [vmem:[#allocation2] sm:$0xff] }
 0xc38   :  { %v1206_v34 = vpop.f32.mrb[24].mxu1 }
 0xc39   :  { %v1915_v35 = vpop.f32.mrb[25].mxu1 }
 0xc3a   :  { %v1209_v36 = vpop.f32.mrb[26].mxu1  ;;  %v1651_v35 = vld [vmem:[#allocation7 + $0xc] ss:$0 sm:$0xff] }
 0xc3b   :  { %v1213_v37 = vpack.c.bf16 %v1209_v36, %v1206_v34  ;;  %v1916_v38 = vpop.f32.mrb[27].mxu1 }
 0xc3d   :  { %1920 = vmatmul.mubr.msk.bf16.vlgmr.msra.gmra.mrb[36].mxu0 %vm758_vm7, %v1213_v37 }
 0xc3e   :  { %1943 = vmatprep.mubr.msk.bf16.mxu0 %vm2141_vm0, %v2140_v0  ;;  %1940 = vmatpush3.bf16.msra.mxu0 %v2005_v41 }
 0xc3f   :  { %1941 = vmatprep.subr.bf16.mxu0 %v2140_v0 }
 0xc42   :  { %1942 = vmatpush3.bf16.msra.mxu0 %v2006_v50 }
 0xc43   :  { %1947 = vmatprep.subr.bf16.mxu0 %v2140_v0 }
 0xd10   :  { %v1251_v42 = vpop.f32.mrb[36].mxu0 }
 0xd11   :  { %v1921_v44 = vpop.f32.mrb[37].mxu0  ;;  %v1258_v46 = vmul.f32 %v1251_v42, %v2307_v51  ;;  %v1645_v51 = vld [vmem:[#allocation7 + $0x9] ss:$0 sm:$0xff] }
 0xd12   :  { %v1254_v45 = vpop.f32.mrb[38].mxu0 }
 0xd13   :  { %v1259_v47 = vmul.f32 %v1254_v45, %v2309_v52  ;;  %v1922_v48 = vpop.f32.mrb[39].mxu0  ;;  %v2038_v45 = vld [vmem:[#allocation2 + $0x8] sm:$0xff] }
 0xd15   :  { %v1260_v49 = vpack.c.bf16 %v1259_v47, %v1258_v46 }
 0xd17   :  { %1936 = vmatmul.mubr.msk.bf16.vlgmr.msra.gmra.mrb[28].mxu1 %vm387_vm2, %v1260_v49 }
 0xdea   :  { %v1334_v53 = vpop.f32.mrb[28].mxu1 }
 0xdeb   :  { %v1937_v54 = vpop.f32.mrb[29].mxu1 }
 0xdec   :  { %v1337_v55 = vpop.f32.mrb[30].mxu1 }
 0xded   :  { %v1341_v56 = vpack.c.bf16 %v1337_v55, %v1334_v53  ;;  %v1938_v57 = vpop.f32.mrb[31].mxu1 }
 0xdef   :  { %1944 = vmatmul.mubr.msk.bf16.vlgmr.msra.gmra.mrb[40].mxu0 %vm183_vm1, %v1341_v56 }
 0xdf0   :  { %1951 = vmatprep.mubr.msk.bf16.mxu0 %vm2141_vm0, %v2140_v0  ;;  %1948 = vmatpush3.bf16.msra.mxu0 %v2007_v7 }
 0xdf1   :  { %1949 = vmatprep.subr.bf16.mxu0 %v2140_v0 }
 0xdf4   :  { %1950 = vmatpush3.bf16.msra.mxu0 %v2008_v8 }
 0xec2   :  { %v1395_v52 = vpop.f32.mrb[40].mxu0 }
 0xec3   :  { %v1396_v58 = vadd.f32 %v1645_v51, %v1395_v52  ;;  %v1945_v59 = vpop.f32.mrb[41].mxu0 }
 0xec4   :  { %v1398_v60 = vpop.f32.mrb[42].mxu0 }
 0xec5   :  { %v1399_v61 = vadd.f32 %v1645_v51, %v1398_v60  ;;  %v1946_v62 = vpop.f32.mrb[43].mxu0  ;;  %v1402_v1 = vsel %vm183_vm1, %v1396_v58, 0.0  ;;  %v1411_v2 = vmul.f32 %v1396_v58, %v1396_v58 }
 0xec6   :  { %1403 = vadd.xlane.f32.xlu0 %v1402_v1 }
 0xec7   :  { %v1405_v3 = vsel %vm183_vm1, %v1399_v61, 0.0  ;;  %v1412_v4 = vmul.f32 %v1399_v61, %v1399_v61  ;;  %v1413_v5 = vsel %vm183_vm1, %v1411_v2, 0.0 }
 0xec8   :  { %1406 = vadd.xlane.f32.xlu1 %v1405_v3 }
 0xec9   :  { %v1416_v6 = vsel %vm183_vm1, %v1412_v4, 0.0 }
 0xeca   :  { %1414 = vadd.xlane.f32.xlu0 %v1413_v5 }
 0xecc   :  { %1417 = vadd.xlane.f32.xlu1 %v1416_v6 }
 0xf53   :  { %v1404_v9 = vpop.xlane.xlu0 %1403 }
 0xf54   :  { %v1409_v10 = vmul.f32 0.03125, %v1404_v9  ;;  %v1655_v9 = vld [vmem:[#allocation7 + $0xd] ss:$0 sm:$0xff] }
 0xf55   :  { %v1407_v11 = vpop.xlane.xlu1 %1406 }
 0xf56   :  { %v1410_v13 = vmul.f32 0.03125, %v1407_v11  ;;  %v1421_v15 = vmul.f32 %v1409_v10, %v1409_v10  ;;  %v1427_v0 = vsub.f32 %v1396_v58, %v1409_v10 }
 0xf57   :  { %v1415_v14 = vpop.xlane.xlu0 %1414 }
 0xf58   :  { %v1419_v63 = vmul.f32 0.03125, %v1415_v14  ;;  %v1422_v17 = vmul.f32 %v1410_v13, %v1410_v13  ;;  %v1428_v20 = vsub.f32 %v1399_v61, %v1410_v13  ;;  %v1656_v14 = vld [vmem:[#allocation7 + $0xe] ss:$0 sm:$0xff] }
 0xf59   :  { %v1418_v16 = vpop.xlane.xlu1 %1417 }
 0xf5a   :  { %v1423_v22 = vsub.f32 %v1419_v63, %v1421_v15  ;;  %v1420_v23 = vmul.f32 0.03125, %v1418_v16 }
 0xf5c   :  { %v1425_v24 = vmax.f32 %v1423_v22, 0.0  ;;  %v1424_v18 = vsub.f32 %v1420_v23, %v1422_v17 }
 0xf5e   :  { %v1429_v19 = vadd.f32 1e-05, %v1425_v24  ;;  %v1426_v25 = vmax.f32 %v1424_v18, 0.0 }
 0xf60   :  { %2029 = vrsqrt.f32 %v1429_v19  ;;  %v1430_v26 = vadd.f32 1e-05, %v1426_v25 }
 0xf62   :  { %2031 = vrsqrt.f32 %v1430_v26 }
 0xf6a   :  { %v2030_v43 = vpop.eup %2029 }
 0xf6b   :  { %v1433_v28 = vmul.f32 %v2030_v43, %v1427_v0 }
 0xf6c   :  { %v2032_v29 = vpop.eup %2031 }
 0xf6d   :  { %v1434_v32 = vmul.f32 %v2032_v29, %v1428_v20  ;;  %v1439_v21 = vmul.f32 %v1649_v27, %v1433_v28 }
 0xf6f   :  { %v1440_v31 = vmul.f32 %v1649_v27, %v1434_v32  ;;  %v1445_v33 = vadd.f32 %v1650_v30, %v1439_v21 }
 0xf71   :  { %v1446_v12 = vadd.f32 %v1650_v30, %v1440_v31 }
 0xf73   :  { %v1447_v34 = vpack.c.bf16 %v1446_v12, %v1445_v33 }
 0xf75   :  { %1952 = vmatmul.mubr.msk.bf16.vlgmr.msra.gmra.mrb[44].mxu0 %vm183_vm1, %v1447_v34 }
0x1048   :  { %v1501_v36 = vpop.f32.mrb[44].mxu0 }
0x1049   :  { %v1502_v37 = vadd.f32 %v1651_v35, %v1501_v36  ;;  %v1953_v38 = vpop.f32.mrb[45].mxu0 }
0x104a   :  { %v1504_v39 = vpop.f32.mrb[46].mxu0 }
0x104b   :  { %v1508_v41 = vadd.f32 %v2037_v40, %v1502_v37  ;;  %v1505_v42 = vadd.f32 %v1651_v35, %v1504_v39  ;;  %v1954_v44 = vpop.f32.mrb[47].mxu0 }
0x104d   :  { %v1509_v46 = vadd.f32 %v2038_v45, %v1505_v42  ;;  %v1510_v47 = vsel %vm183_vm1, %v1508_v41, 0.0  ;;  %v1518_v48 = vmul.f32 %v1508_v41, %v1508_v41 }
0x104e   :  { %1511 = vadd.xlane.f32.xlu0 %v1510_v47 }
0x104f   :  { %v1513_v49 = vsel %vm183_vm1, %v1509_v46, 0.0  ;;  %v1519_v50 = vmul.f32 %v1509_v46, %v1509_v46  ;;  %v1520_v53 = vsel %vm183_vm1, %v1518_v48, 0.0 }
0x1050   :  { %1514 = vadd.xlane.f32.xlu1 %v1513_v49 }
0x1051   :  { %v1523_v54 = vsel %vm183_vm1, %v1519_v50, 0.0 }
0x1052   :  { %1521 = vadd.xlane.f32.xlu0 %v1520_v53 }
0x1054   :  { %1524 = vadd.xlane.f32.xlu1 %v1523_v54 }
0x10db   :  { %v1512_v55 = vpop.xlane.xlu0 %1511 }
0x10dc   :  { %v1516_v56 = vmul.f32 0.03125, %v1512_v55 }
0x10dd   :  { %v1515_v57 = vpop.xlane.xlu1 %1514 }
0x10de   :  { %v1517_v51 = vmul.f32 0.03125, %v1515_v57  ;;  %v1528_v58 = vmul.f32 %v1516_v56, %v1516_v56  ;;  %v1534_v7 = vsub.f32 %v1508_v41, %v1516_v56 }
0x10df   :  { %v1522_v52 = vpop.xlane.xlu0 %1521 }
0x10e0   :  { %v1526_v59 = vmul.f32 0.03125, %v1522_v52  ;;  %v1529_v61 = vmul.f32 %v1517_v51, %v1517_v51  ;;  %v1535_v10 = vsub.f32 %v1509_v46, %v1517_v51 }
0x10e1   :  { %v1525_v60 = vpop.xlane.xlu1 %1524 }
0x10e2   :  { %v1530_v62 = vsub.f32 %v1526_v59, %v1528_v58  ;;  %v1527_v1 = vmul.f32 0.03125, %v1525_v60 }
0x10e4   :  { %v1532_v2 = vmax.f32 %v1530_v62, 0.0  ;;  %v1531_v3 = vsub.f32 %v1527_v1, %v1529_v61 }
0x10e6   :  { %v1536_v4 = vadd.f32 1e-05, %v1532_v2  ;;  %v1533_v5 = vmax.f32 %v1531_v3, 0.0 }
0x10e8   :  { %2033 = vrsqrt.f32 %v1536_v4  ;;  %v1537_v6 = vadd.f32 1e-05, %v1533_v5 }
0x10ea   :  { %2035 = vrsqrt.f32 %v1537_v6 }
0x10f2   :  { %v2034_v8 = vpop.eup %2033 }
0x10f3   :  { %v1540_v11 = vmul.f32 %v2034_v8, %v1534_v7 }
0x10f4   :  { %v2036_v13 = vpop.eup %2035 }
0x10f5   :  { %v1541_v15 = vmul.f32 %v2036_v13, %v1535_v10  ;;  %v1546_v63 = vmul.f32 %v1655_v9, %v1540_v11 }
0x10f7   :  { %v1547_v16 = vmul.f32 %v1655_v9, %v1541_v15  ;;  %v1552_v17 = vadd.f32 %v1656_v14, %v1546_v63 }
0x10f9   :  { %v1553_v22 = vadd.f32 %v1656_v14, %v1547_v16  ;;  %1554 = vst.msk [vmem:[#allocation8] sm:$0xff] %vm183_vm1, %v1552_v17 }
0x10fb   :  { %1555 = vst.msk [vmem:[#allocation8 + $0x8] sm:$0xff] %vm183_vm1, %v1553_v22 }
0x10fc   :  { %2116 = shalt.err (!%p2113_p0)
}
0x10fd   :  { %s2117_s27 = scalar_lea.hbm %s2443_s3, 256 }
0x10fe   :  { %p2118_p1 = scmp.ne.s32.totalorder %s2443_s3, %s2117_s27  ;;  %p2121_p2 = scmp.lt.u32.totalorder %s2117_s27, %s2443_s3 }
0x1100   :  { %p2123_p3 = pnand %p2121_p2, %p2118_p1 }
0x1102   :  { %2126 = shalt.err (!%p2123_p3)
}
0x1103   :  { %1567 = dma.vmem_to_hbm [thread:$0]  %s1562_s23, 256, %s2443_s3, [#allocation4], %s2137_s1, %s2137_s1, %s2138_s9  }
0x1104   :  { %2131 = dma.done.wait [#allocation4], 256  }
0x1105   :  { %2132 = vsyncadd [#allocation4], 4294967040 }
0x1106   :  { %1571 = vsyncpa [#allocation3], 1 }
0x1107   :  { %1572 = vsyncpa [#allocation6], 1 }
0x1108   :  { %1573 = vsyncpa [#allocation4], 1 }

</bundles_post_ra>
